<compile_context>
chip_gen: v5e
topology: v5e:2x2
jax: 0.10.0
libtpu: 0.0.40
codegen_flags: <defaults>
</compile_context>

<pallas_src>
import jax
import jax.numpy as jnp
from jax.experimental import pallas as pl
from jax.experimental.pallas import tpu as pltpu


def _round_up(v, m):
    return ((v + m - 1) // m) * m


# -----------------------------------------------------------------------------
# Shared core: Conv3x3 (no bias) + InstanceNorm(affine=False) + ReLU
# -----------------------------------------------------------------------------
def _conv3x3_instnorm_relu(xpad_bf, w_ref, H, W):
    """xpad_bf: [H+2, W+2, Cp] bf16 value; w_ref: [3, 3*Cp, TCO] bf16 ref.

    Weights are row-tap stacked: w_ref[di, dj*Cp + cin, cout]. Returns [H, W, TCO] f32.
    """
    cp = xpad_bf.shape[-1]
    tco = w_ref.shape[2]

    acc = jnp.zeros((H * W, tco), jnp.float32)
    for di in range(3):                                  # static unroll, 3 row taps
        rows = xpad_bf[di:di + H]                        # [H, W+2, Cp] leading-dim slice
        patch = jnp.concatenate(                         # K-concat of the 3 column taps
            [rows[:, 0:W, :], rows[:, 1:W + 1, :], rows[:, 2:W + 2, :]],
            axis=-1).reshape(H * W, 3 * cp)              # [H*W, 3*Cp] bf16, lane-aligned
        acc = acc + jnp.dot(patch, w_ref[di],            # fat GEMM: K = 3*Cp
                            preferred_element_type=jnp.float32)
    # NOTE: conv bias intentionally omitted -- a per-channel constant is cancelled
    # exactly by the InstanceNorm(affine=False) mean subtraction.

    # One-pass InstanceNorm stats (biased variance, eps=1e-5), per channel over H*W.
    inv_n = 1.0 / float(H * W)
    mean = jnp.sum(acc, axis=0, keepdims=True) * inv_n
    ex2 = jnp.sum(acc * acc, axis=0, keepdims=True) * inv_n
    var = jnp.maximum(ex2 - mean * mean, 0.0)
    y = (acc - mean) * jax.lax.rsqrt(var + 1e-5)
    y = jnp.maximum(y, 0.0)                              # ReLU
    # TODO(synk): nn.Dropout(0.5) is identity in eval mode; training-mode RNG dropout
    # is not implemented.
    return y.reshape(H, W, tco)


# -----------------------------------------------------------------------------
# Kernel A: whole channel range in one step (de-duplicated activation stream)
# -----------------------------------------------------------------------------
def _resnet_block_kernel_full(xpad_ref, w_ref, o_ref):
    """xpad_ref: [1,H+2,W+2,Cp] f32; w_ref: [3,3*Cp,Cp] bf16; o_ref: [1,H,W,Cp] f32."""
    _, hp2, wp2, _ = xpad_ref.shape
    H, W = hp2 - 2, wp2 - 2
    xpad = xpad_ref[0]                                   # f32, also supplies the residual
    y = _conv3x3_instnorm_relu(xpad.astype(jnp.bfloat16), w_ref, H, W)
    o_ref[0] = xpad[1:H + 1, 1:W + 1, :] + y             # exact f32 residual skip-add


# -----------------------------------------------------------------------------
# Kernel B: output-channel-tiled variant (separate f32 residual block per tile)
# -----------------------------------------------------------------------------
def _resnet_block_kernel_cotile(xpad_ref, xres_ref, w_ref, o_ref):
    """xpad_ref: [1,H+2,W+2,Cp] bf16; xres_ref/o_ref: [1,H,W,TCO] f32; w_ref: [3,3*Cp,TCO]."""
    _, hp2, wp2, _ = xpad_ref.shape
    H, W = hp2 - 2, wp2 - 2
    y = _conv3x3_instnorm_relu(xpad_ref[0], w_ref, H, W)
    o_ref[0] = xres_ref[0] + y


# -----------------------------------------------------------------------------
# VMEM budget estimate (review: don't hard-code 48 MiB; v7x has only 64 MiB)
# -----------------------------------------------------------------------------
def _vmem_limit_bytes(H, W, cp, tco, n_co):
    pad_e = (H + 2) * (W + 2) * cp
    hw = H * W
    if n_co == 1:
        streams = 2 * (pad_e * 4 + 9 * cp * cp * 2 + hw * cp * 4)         # dbl-buffered
        temps = pad_e * 2 + 2 * hw * 3 * cp * 2 + 5 * hw * cp * 4
    else:
        streams = 2 * (pad_e * 2 + hw * tco * 4 + 9 * cp * tco * 2 + hw * tco * 4)
        temps = 2 * hw * 3 * cp * 2 + 5 * hw * tco * 4
    need = streams + temps + (8 << 20)       # headroom for compiler-internal scratch
    # TODO(synk): for feature maps too large for one resident block, add a spatial
    # row-tile grid axis with two-pass IN stats instead of growing this limit.
    return int(min(max(need, 16 << 20), 64 << 20))


# -----------------------------------------------------------------------------
# Wrapper: layout plumbing (NCHW <-> NHWC, channel padding) + pallas_call
# -----------------------------------------------------------------------------
def resnet_block_forward(x, w, b=None, *, tile_co=None):
    """x: [N,C,H,W] f32; w: [C,C,3,3] (PyTorch OIHW); b: [C] (ignored: cancelled by IN)."""
    del b  # conv bias is mathematically cancelled by InstanceNorm(affine=False)
    N, C, H, W = x.shape
    Cp = _round_up(C, 128)                               # lane-dense channels
    if tile_co is None:
        tile_co = min(Cp, 256)                           # 256-wide N tile for v6e/v7x MXUs
    assert Cp % tile_co == 0 and tile_co % 128 == 0
    n_co = Cp // tile_co

    # NHWC activations; zero-pad channels (sliced off at the end), reflect-pad H/W.
    x_nhwc = jnp.transpose(x, (0, 2, 3, 1)).astype(jnp.float32)          # [N,H,W,C]
    if Cp != C:
        x_nhwc = jnp.pad(x_nhwc, ((0, 0), (0, 0), (0, 0), (0, Cp - C)))
    x_pad = jnp.pad(x_nhwc, ((0, 0), (1, 1), (1, 1), (0, 0)), mode="reflect")

    # Weights OIHW -> [di, dj, Cin, Cout] -> pad -> [3, 3*Cp, Cp]; K index = dj*Cp + cin.
    w_t = jnp.transpose(w, (2, 3, 1, 0))
    w_t = jnp.pad(w_t, ((0, 0), (0, 0), (0, Cp - C), (0, Cp - C)))
    w_stk = w_t.reshape(3, 3 * Cp, Cp).astype(jnp.bfloat16)

    vmem_limit = _vmem_limit_bytes(H, W, Cp, tile_co, n_co)

    if n_co == 1:
        # Single activation stream (f32 padded NHWC); residual taken from its interior.
        out = pl.pallas_call(
            _resnet_block_kernel_full,
            out_shape=jax.ShapeDtypeStruct((N, H, W, Cp), jnp.float32),
            grid=(N,),
            in_specs=[
                pl.BlockSpec((1, H + 2, W + 2, Cp), lambda n: (n, 0, 0, 0)),
                pl.BlockSpec((3, 3 * Cp, Cp), lambda n: (0, 0, 0)),
            ],
            out_specs=pl.BlockSpec((1, H, W, Cp), lambda n: (n, 0, 0, 0)),
            compiler_params=pltpu.CompilerParams(
                dimension_semantics=("parallel",),
                vmem_limit_bytes=vmem_limit,
            ),
        )(x_pad, w_stk)
    else:
        # Output-channel-tiled grid; batch innermost so the weight block stays resident.
        x_pad_bf = x_pad.astype(jnp.bfloat16)
        out = pl.pallas_call(
            _resnet_block_kernel_cotile,
            out_shape=jax.ShapeDtypeStruct((N, H, W, Cp), jnp.float32),
            grid=(n_co, N),
            in_specs=[
                pl.BlockSpec((1, H + 2, W + 2, Cp), lambda co, n: (n, 0, 0, 0)),
                pl.BlockSpec((1, H, W, tile_co), lambda co, n: (n, 0, 0, co)),
                pl.BlockSpec((3, 3 * Cp, tile_co), lambda co, n: (0, 0, co)),
            ],
            out_specs=pl.BlockSpec((1, H, W, tile_co), lambda co, n: (n, 0, 0, co)),
            compiler_params=pltpu.CompilerParams(
                dimension_semantics=("parallel", "parallel"),
                vmem_limit_bytes=vmem_limit,
            ),
        )(x_pad_bf, x_nhwc, w_stk)

    out = out[..., :C]
    return jnp.transpose(out, (0, 3, 1, 2))              # back to NCHW


# -----------------------------------------------------------------------------
# Pure-JAX reference (same bf16 conv inputs, f32 accumulate, bias kept) for validation
# -----------------------------------------------------------------------------
def resnet_block_reference(x, w, b):
    xp = jnp.pad(x, ((0, 0), (0, 0), (1, 1), (1, 1)), mode="reflect")
    conv = jax.lax.conv_general_dilated(
        xp.astype(jnp.bfloat16), w.astype(jnp.bfloat16),
        window_strides=(1, 1), padding="VALID",
        dimension_numbers=("NCHW", "OIHW", "NCHW"),
        preferred_element_type=jnp.float32)
    conv = conv + b.reshape(1, -1, 1, 1)
    mean = jnp.mean(conv, axis=(2, 3), keepdims=True)
    var = jnp.mean(jnp.square(conv - mean), axis=(2, 3), keepdims=True)
    y = (conv - mean) * jax.lax.rsqrt(var + 1e-5)
    y = jnp.maximum(y, 0.0)
    return x + y


if __name__ == "__main__":
    key = jax.random.PRNGKey(0)
    k_x, k_w, k_b, k_x2, k_w2, k_b2 = jax.random.split(key, 6)

    # Case 1: single cout tile (de-duplicated f32 activation stream path).
    batch, channels, spatial = 2, 128, 16
    x = jax.random.uniform(k_x, (batch, channels, spatial, spatial),
                           jnp.float32, -1.0, 1.0)
    w = jax.random.normal(k_w, (channels, channels, 3, 3), jnp.float32) * 0.05
    b = jax.random.normal(k_b, (channels,), jnp.float32) * 0.05

    out = jax.block_until_ready(jax.jit(resnet_block_forward)(x, w, b))
    assert out.shape == (batch, channels, spatial, spatial), out.shape
    assert out.dtype == jnp.float32
    assert bool(jnp.all(jnp.isfinite(out)))
    err1 = float(jnp.max(jnp.abs(out - resnet_block_reference(x, w, b))))
    assert err1 < 2e-2, f"case1 max abs error vs reference: {err1}"

    # Case 2: multiple cout tiles (exercises the channel-tiled grid path).
    batch2, channels2, spatial2 = 1, 256, 8
    x2 = jax.random.uniform(k_x2, (batch2, channels2, spatial2, spatial2),
                            jnp.float32, -1.0, 1.0)
    w2 = jax.random.normal(k_w2, (channels2, channels2, 3, 3), jnp.float32) * 0.04
    b2 = jax.random.normal(k_b2, (channels2,), jnp.float32) * 0.04

    fwd2 = jax.jit(lambda a, ww, bb: resnet_block_forward(a, ww, bb, tile_co=128))
    out2 = jax.block_until_ready(fwd2(x2, w2, b2))
    assert out2.shape == (batch2, channels2, spatial2, spatial2), out2.shape
    assert bool(jnp.all(jnp.isfinite(out2)))
    err2 = float(jnp.max(jnp.abs(out2 - resnet_block_reference(x2, w2, b2))))
    assert err2 < 2e-2, f"case2 max abs error vs reference: {err2}"

    print("KERNEL_OK")
</pallas_src>

<mosaic_0001>
module attributes {stable_mosaic.version = 11 : i64} {
  func.func @_resnet_block_kernel_full(%arg0: i32, %arg1: memref<1x18x18x128xf32, #tpu.memory_space<vmem>>, %arg2: memref<3x384x128xbf16, #tpu.memory_space<vmem>>, %arg3: memref<1x16x16x128xf32, #tpu.memory_space<vmem>>) attributes {dimension_semantics = [#tpu.dimension_semantics<parallel>], iteration_bounds = array<i64: 2>, scalar_prefetch = 0 : i64, scratch_operands = 0 : i64, tpu.core_type = #tpu.core_type<tc>, window_params = [{transform_indices = @transform_0, window_bounds = array<i64: 1, 18, 18, 128>}, {pipeline_mode = #tpu.pipeline_mode<synchronous>, transform_indices = @transform_1, window_bounds = array<i64: 3, 384, 128>}, {transform_indices = @transform_2, window_bounds = array<i64: 1, 16, 16, 128>}]} {
    %c0 = arith.constant 0 : index
    %c0_0 = arith.constant 0 : index
    %c0_1 = arith.constant 0 : index
    %c0_2 = arith.constant 0 : index
    %0 = vector.load %arg1[%c0, %c0_0, %c0_1, %c0_2] : memref<1x18x18x128xf32, #tpu.memory_space<vmem>>, vector<1x18x18x128xf32>
    %1 = vector.shape_cast %0 : vector<1x18x18x128xf32> to vector<18x18x128xf32>
    %2 = arith.truncf %1 : vector<18x18x128xf32> to vector<18x18x128xbf16>
    %cst = arith.constant 0.000000e+00 : f32
    %3 = vector.broadcast %cst : f32 to vector<256x128xf32>
    %4 = vector.extract_strided_slice %2 {offsets = [0, 0, 0], sizes = [16, 18, 128], strides = [1, 1, 1]} : vector<18x18x128xbf16> to vector<16x18x128xbf16>
    %5 = vector.extract_strided_slice %4 {offsets = [0, 0, 0], sizes = [16, 16, 128], strides = [1, 1, 1]} : vector<16x18x128xbf16> to vector<16x16x128xbf16>
    %6 = vector.extract_strided_slice %4 {offsets = [0, 1, 0], sizes = [16, 16, 128], strides = [1, 1, 1]} : vector<16x18x128xbf16> to vector<16x16x128xbf16>
    %7 = vector.extract_strided_slice %4 {offsets = [0, 2, 0], sizes = [16, 16, 128], strides = [1, 1, 1]} : vector<16x18x128xbf16> to vector<16x16x128xbf16>
    %8 = tpu.concatenate %5, %6, %7 in 2 : vector<16x16x128xbf16>, vector<16x16x128xbf16>, vector<16x16x128xbf16> -> vector<16x16x384xbf16>
    %9 = vector.shape_cast %8 : vector<16x16x384xbf16> to vector<256x384xbf16>
    %c0_3 = arith.constant 0 : index
    %c0_4 = arith.constant 0 : index
    %c0_5 = arith.constant 0 : index
    %10 = vector.load %arg2[%c0_3, %c0_4, %c0_5] : memref<3x384x128xbf16, #tpu.memory_space<vmem>>, vector<1x384x128xbf16>
    %11 = vector.shape_cast %10 : vector<1x384x128xbf16> to vector<384x128xbf16>
    %cst_6 = arith.constant dense<0.000000e+00> : vector<256x128xf32>
    %12 = tpu.matmul %9, %11, %cst_6 {dimension_numbers = #tpu.dot_dimension_numbers<[1], [0], [0], [1], [0, 0, 1, 1], [], []>} : vector<256x384xbf16>, vector<384x128xbf16>, vector<256x128xf32> -> vector<256x128xf32>
    %13 = arith.addf %3, %12 : vector<256x128xf32>
    %14 = vector.extract_strided_slice %2 {offsets = [1, 0, 0], sizes = [16, 18, 128], strides = [1, 1, 1]} : vector<18x18x128xbf16> to vector<16x18x128xbf16>
    %15 = vector.extract_strided_slice %14 {offsets = [0, 0, 0], sizes = [16, 16, 128], strides = [1, 1, 1]} : vector<16x18x128xbf16> to vector<16x16x128xbf16>
    %16 = vector.extract_strided_slice %14 {offsets = [0, 1, 0], sizes = [16, 16, 128], strides = [1, 1, 1]} : vector<16x18x128xbf16> to vector<16x16x128xbf16>
    %17 = vector.extract_strided_slice %14 {offsets = [0, 2, 0], sizes = [16, 16, 128], strides = [1, 1, 1]} : vector<16x18x128xbf16> to vector<16x16x128xbf16>
    %18 = tpu.concatenate %15, %16, %17 in 2 : vector<16x16x128xbf16>, vector<16x16x128xbf16>, vector<16x16x128xbf16> -> vector<16x16x384xbf16>
    %19 = vector.shape_cast %18 : vector<16x16x384xbf16> to vector<256x384xbf16>
    %c1 = arith.constant 1 : index
    %c0_7 = arith.constant 0 : index
    %c0_8 = arith.constant 0 : index
    %20 = vector.load %arg2[%c1, %c0_7, %c0_8] : memref<3x384x128xbf16, #tpu.memory_space<vmem>>, vector<1x384x128xbf16>
    %21 = vector.shape_cast %20 : vector<1x384x128xbf16> to vector<384x128xbf16>
    %cst_9 = arith.constant dense<0.000000e+00> : vector<256x128xf32>
    %22 = tpu.matmul %19, %21, %cst_9 {dimension_numbers = #tpu.dot_dimension_numbers<[1], [0], [0], [1], [0, 0, 1, 1], [], []>} : vector<256x384xbf16>, vector<384x128xbf16>, vector<256x128xf32> -> vector<256x128xf32>
    %23 = arith.addf %13, %22 : vector<256x128xf32>
    %24 = vector.extract_strided_slice %2 {offsets = [2, 0, 0], sizes = [16, 18, 128], strides = [1, 1, 1]} : vector<18x18x128xbf16> to vector<16x18x128xbf16>
    %25 = vector.extract_strided_slice %24 {offsets = [0, 0, 0], sizes = [16, 16, 128], strides = [1, 1, 1]} : vector<16x18x128xbf16> to vector<16x16x128xbf16>
    %26 = vector.extract_strided_slice %24 {offsets = [0, 1, 0], sizes = [16, 16, 128], strides = [1, 1, 1]} : vector<16x18x128xbf16> to vector<16x16x128xbf16>
    %27 = vector.extract_strided_slice %24 {offsets = [0, 2, 0], sizes = [16, 16, 128], strides = [1, 1, 1]} : vector<16x18x128xbf16> to vector<16x16x128xbf16>
    %28 = tpu.concatenate %25, %26, %27 in 2 : vector<16x16x128xbf16>, vector<16x16x128xbf16>, vector<16x16x128xbf16> -> vector<16x16x384xbf16>
    %29 = vector.shape_cast %28 : vector<16x16x384xbf16> to vector<256x384xbf16>
    %c2 = arith.constant 2 : index
    %c0_10 = arith.constant 0 : index
    %c0_11 = arith.constant 0 : index
    %30 = vector.load %arg2[%c2, %c0_10, %c0_11] : memref<3x384x128xbf16, #tpu.memory_space<vmem>>, vector<1x384x128xbf16>
    %31 = vector.shape_cast %30 : vector<1x384x128xbf16> to vector<384x128xbf16>
    %cst_12 = arith.constant dense<0.000000e+00> : vector<256x128xf32>
    %32 = tpu.matmul %29, %31, %cst_12 {dimension_numbers = #tpu.dot_dimension_numbers<[1], [0], [0], [1], [0, 0, 1, 1], [], []>} : vector<256x384xbf16>, vector<384x128xbf16>, vector<256x128xf32> -> vector<256x128xf32>
    %33 = arith.addf %23, %32 : vector<256x128xf32>
    %cst_13 = arith.constant dense<0.000000e+00> : vector<128xf32>
    %34 = vector.multi_reduction <add>, %33, %cst_13 [0] : vector<256x128xf32> to vector<128xf32>
    %35 = vector.shape_cast %34 : vector<128xf32> to vector<1x128xf32>
    %cst_14 = arith.constant 3.906250e-03 : f32
    %36 = vector.broadcast %cst_14 : f32 to vector<1x128xf32>
    %37 = arith.mulf %35, %36 : vector<1x128xf32>
    %38 = arith.mulf %33, %33 : vector<256x128xf32>
    %cst_15 = arith.constant dense<0.000000e+00> : vector<128xf32>
    %39 = vector.multi_reduction <add>, %38, %cst_15 [0] : vector<256x128xf32> to vector<128xf32>
    %40 = vector.shape_cast %39 : vector<128xf32> to vector<1x128xf32>
    %cst_16 = arith.constant 3.906250e-03 : f32
    %41 = vector.broadcast %cst_16 : f32 to vector<1x128xf32>
    %42 = arith.mulf %40, %41 : vector<1x128xf32>
    %43 = arith.mulf %37, %37 : vector<1x128xf32>
    %44 = arith.subf %42, %43 : vector<1x128xf32>
    %cst_17 = arith.constant 0.000000e+00 : f32
    %45 = vector.broadcast %cst_17 : f32 to vector<1x128xf32>
    %46 = arith.maximumf %44, %45 : vector<1x128xf32>
    %47 = vector.broadcast %37 : vector<1x128xf32> to vector<256x128xf32>
    %48 = arith.subf %33, %47 : vector<256x128xf32>
    %cst_18 = arith.constant 9.99999974E-6 : f32
    %49 = vector.broadcast %cst_18 : f32 to vector<1x128xf32>
    %50 = arith.addf %46, %49 : vector<1x128xf32>
    %51 = math.rsqrt %50 : vector<1x128xf32>
    %52 = vector.broadcast %51 : vector<1x128xf32> to vector<256x128xf32>
    %53 = arith.mulf %48, %52 : vector<256x128xf32>
    %cst_19 = arith.constant 0.000000e+00 : f32
    %54 = vector.broadcast %cst_19 : f32 to vector<256x128xf32>
    %55 = arith.maximumf %53, %54 : vector<256x128xf32>
    %56 = vector.shape_cast %55 : vector<256x128xf32> to vector<16x16x128xf32>
    %57 = vector.extract_strided_slice %1 {offsets = [1, 1, 0], sizes = [16, 16, 128], strides = [1, 1, 1]} : vector<18x18x128xf32> to vector<16x16x128xf32>
    %58 = arith.addf %57, %56 : vector<16x16x128xf32>
    %c0_20 = arith.constant 0 : index
    %c0_21 = arith.constant 0 : index
    %c0_22 = arith.constant 0 : index
    %c0_23 = arith.constant 0 : index
    %59 = vector.load %arg3[%c0_20, %c0_21, %c0_22, %c0_23] : memref<1x16x16x128xf32, #tpu.memory_space<vmem>>, vector<1x16x16x128xf32>
    %60 = vector.shape_cast %59 : vector<1x16x16x128xf32> to vector<16x16x128xf32>
    %61 = vector.shape_cast %58 : vector<16x16x128xf32> to vector<1x16x16x128xf32>
    tpu.vector_store %arg3[%c0_20, %c0_21, %c0_22, %c0_23], %61 {strides = array<i32>} : memref<1x16x16x128xf32, #tpu.memory_space<vmem>>, vector<1x16x16x128xf32>,
    return
  }
  func.func @transform_0(%arg0: i32) -> (i32, i32, i32, i32) {
    %c0_i32 = arith.constant 0 : i32
    %c0_i32_0 = arith.constant 0 : i32
    %c0_i32_1 = arith.constant 0 : i32
    %c0_i32_2 = arith.constant 0 : i32
    return %arg0, %c0_i32, %c0_i32_0, %c0_i32_1 : i32, i32, i32, i32
  }
  func.func @transform_1(%arg0: i32) -> (i32, i32, i32) {
    %c0_i32 = arith.constant 0 : i32
    %c0_i32_0 = arith.constant 0 : i32
    %c0_i32_1 = arith.constant 0 : i32
    %c0_i32_2 = arith.constant 0 : i32
    return %c0_i32, %c0_i32_0, %c0_i32_1 : i32, i32, i32
  }
  func.func @transform_2(%arg0: i32) -> (i32, i32, i32, i32) {
    %c0_i32 = arith.constant 0 : i32
    %c0_i32_0 = arith.constant 0 : i32
    %c0_i32_1 = arith.constant 0 : i32
    %c0_i32_2 = arith.constant 0 : i32
    return %arg0, %c0_i32, %c0_i32_0, %c0_i32_1 : i32, i32, i32, i32
  }
}

</mosaic_0001>

<bundles_post_ra>
// kernel: resnet_block_forward.1
= control target key start
LH: loop header
LB: loop body
LE: loop exit
PB: predicated region body
PF: predicated region fallthrough
CT: control target
= control target key end

     0   :  { %7 = vsyncpa [#allocation3], 0  ;;  %s4779_s0 = inlined_call_operand.vmem [shape: f32[2,18,18,128], index: 0, kind: input, shape index: {}]   ;;  %s4780_s1 = inlined_call_operand.vmem [shape: bf16[3,384,128], index: 1, kind: input, shape index: {}]   ;;  %s4781_s2 = inlined_call_operand.hbm [shape: f32[2,16,16,128], index: 2, kind: output, shape index: {}]  }
   0x1   :  { %9 = vsyncpa [#allocation3 + $0x1], 0  ;;  %s3317_s9 = smov 0   ;;  %s3319_s10 = smov 0  }
   0x2   :  { %s3321_s11 = smov 0   ;;  %s3323_s12 = smov 0  }
   0x3 LB: > { %s3338_s13 = sadd.s32 4294967295, %s3298_s12   ;;  %s2652_s14 = sadd.s32 4294967294, %s3298_s12   ;;  %s3298_s12 = sphi %s3323_s12, %s4890_s12   ;;  %s3294_s11 = sphi %s3321_s11, %s4889_s11   ;;  %s3290_s10 = sphi %s3319_s10, %s4888_s10   ;;  %s3286_s9 = sphi %s3317_s9, %s4887_s9  }
   0x4   : > { %s3342_s15 = sadd.s32 1, %s3298_s12   ;;  %s69_s16 = sadd.s32 1, %s3294_s11 }
   0x5   : > { %s66_s17 = ssub.s32 %s3298_s12, %s3342_s15  ;;  %p79_p0 = scmp.ne.s32.totalorder %s3294_s11, %s3290_s10 }
   0x6   : > { %p67_p1 = scmp.eq.s32.totalorder %s66_s17, 0  ;;  %p80_p2 = scmp.eq.s32.totalorder %s3338_s13, 1 }
   0x7   : > { %p85_p3 = scmp.ne.s32.totalorder %s3290_s10, %s3286_s9  ;;  %p86_p4 = scmp.eq.s32.totalorder %s2652_s14, 1 }
   0x8   : > { %s3353_s18 = scalar_select %p67_p1, %s3294_s11, %s69_s16  }
   0x9   : > { %p3355_p5 = por %p80_p2, %p79_p0  ;;  %p3359_p6 = por %p86_p4, %p85_p3 }
   0xa   : > { %p2655_p7 = scmp.ge.s32.totalorder %s3298_s12, 1  ;;  %p115_p8 = scmp.lt.s32.totalorder %s3298_s12, 3 }
   0xc   : > { %p116_p9 = pnand %p2655_p7, %p115_p8 }
   0xe   : > { %119 = sbr.rel (%p116_p9) target bundleno = 878 (0x36e), region = 28 }
  0x13   : > { %v3078_v0 = vld [vmem:[%s4780_s1 + $0xf8] sm:$0xff]  ;;  %v3077_v1 = vld [vmem:[%s4780_s1 + $0xf0] sm:$0xff]  ;;  %p137_p10 = scmp.lt.s32.totalorder %s3338_s13, 1  ;;  %v3076_v2 = vld [vmem:[%s4780_s1 + $0xe8] sm:$0xff]  ;;  %vm394_vm0 = vsmask.f32 7424 }
  0x14   : > { %935 = vmatpush.bf16.msra.mxu0 %v3078_v0  ;;  %3120 = vmatpush.bf16.msra.mxu1 %v3078_v0  ;;  %v3075_v3 = vld [vmem:[%s4780_s1 + $0xe0] sm:$0xff]  ;;  %v3074_v4 = vld [vmem:[%s4780_s1 + $0xd8] sm:$0xff]  ;;  %v3073_v5 = vld [vmem:[%s4780_s1 + $0xd0] sm:$0xff]  ;;  %vm603_vm1 = vcmask 1046528   ;;  %vm2381_vm2 = vcmask 1040384   ;;  %s134_s25 = sand.u32 1, %s3290_s10  }
  0x15   : > { %3121 = vmatpush.bf16.msra.mxu2 %v3078_v0  ;;  %3122 = vmatpush.bf16.msra.mxu3 %v3078_v0  ;;  %s138_s27 = scalar_select %p137_p10, %s3338_s13, 1  ;;  %v3072_v19 = vld [vmem:[%s4780_s1 + $0xc8] sm:$0xff]  ;;  %v3071_v27 = vld [vmem:[%s4780_s1 + $0xc0] sm:$0xff]  ;;  %v3094_v32 = vld [vmem:[%s4780_s1 + $0x178] sm:$0xff] }
  0x16   : > { %v3054_v33 = vld [vmem:[%s4780_s1 + $0x38] sm:$0xff]  ;;  %v3093_v40 = vld [vmem:[%s4780_s1 + $0x170] sm:$0xff]  ;;  %v3092_v52 = vld [vmem:[%s4780_s1 + $0x168] sm:$0xff]  ;;  %s2656_s26 = sshll.u32 %s134_s25, 8  ;;  %s3119_s28 = sshll.u32 %s3338_s13, 8 }
  0x17   : > { %s3144_s30 = smul.u32 432, %s138_s27  ;;  %v3086_v38 = vld [vmem:[%s4780_s1 + $0x138] sm:$0xff]  ;;  %v3053_v41 = vld [vmem:[%s4780_s1 + $0x30] sm:$0xff]  ;;  %v3052_v53 = vld [vmem:[%s4780_s1 + $0x28] sm:$0xff]  ;;  %s4452_s27 = scalar_lea.vmem [#allocation2], %s2656_s26 }
  0x18   : > { %936 = vmatpush.bf16.msra.mxu0 %v3077_v1  ;;  %3123 = vmatpush.bf16.msra.mxu1 %v3077_v1  ;;  %v3062_v39 = vld [vmem:[%s4780_s1 + $0x78] sm:$0xff]  ;;  %v3085_v50 = vld [vmem:[%s4780_s1 + $0x130] sm:$0xff]  ;;  %v3084_v62 = vld [vmem:[%s4780_s1 + $0x128] sm:$0xff]  ;;  %s2587_s3 = sshll.u32 %s4452_s27, 4  ;;  %s2575_s5 = scalar_lea.sflag [#allocation3], %s134_s25  ;;  %s2588_s3 = int_to_ptr.vmem [resolvable:$true] %s2587_s3 }
  0x19   : > { %3124 = vmatpush.bf16.msra.mxu2 %v3077_v1  ;;  %3125 = vmatpush.bf16.msra.mxu3 %v3077_v1  ;;  %s3385_s7 = scalar_lea.vmem %s4779_s0, %s3144_s30  ;;  %v3061_v51 = vld [vmem:[%s4780_s1 + $0x70] sm:$0xff]  ;;  %v3060_v63 = vld [vmem:[%s4780_s1 + $0x68] sm:$0xff]  ;;  %v3091_v0 = vld [vmem:[%s4780_s1 + $0x160] sm:$0xff]  ;;  %s2586_s30 = scalar_lea.hbm %s4781_s2, %s3119_s28 }
  0x1a   : > { %v145_v6 = vld [vmem:[%s3385_s7 + $0x18] sm:$0xff]  ;;  %v146_v7 = vld [vmem:[%s3385_s7 + $0x20] sm:$0xff]  ;;  %v148_v42 = vld [vmem:[%s3385_s7 + $0x30] sm:$0xff]  ;;  %s2589_s4 = sshll.u32 %s2586_s30, 4  ;;  %s3256_s16 = scalar_lea.hbm %s4781_s2, 512  ;;  %s2590_s4 = int_to_ptr.hbm [resolvable:$true] %s2589_s4 }
  0x1b   : > { %v157_v8 = vld [vmem:[%s3385_s7 + $0x78] sm:$0xff]  ;;  %v158_v9 = vld [vmem:[%s3385_s7 + $0x80] sm:$0xff]  ;;  %v199_v14 = vpack.c.bf16 %v145_v6, %v145_v6  ;;  %v200_v15 = vpack.c.bf16 %v146_v7, %v146_v7  ;;  %v160_v44 = vld [vmem:[%s3385_s7 + $0x90] sm:$0xff]  ;;  %v202_v54 = vpack.c.bf16 %v148_v42, %v148_v42  ;;  %s3250_s6 = sshra.s32 %s2590_s4, 4  ;;  %s3251_s6 = int_to_ptr.hbm [resolvable:$true] %s3250_s6 }
  0x1c   : > { %937 = vmatpush.bf16.msra.mxu0 %v3076_v2  ;;  %3126 = vmatpush.bf16.msra.mxu1 %v3076_v2  ;;  %v169_v10 = vld [vmem:[%s3385_s7 + $0xd8] sm:$0xff]  ;;  %v170_v11 = vld [vmem:[%s3385_s7 + $0xe0] sm:$0xff]  ;;  %v211_v16 = vpack.c.bf16 %v157_v8, %v157_v8  ;;  %v212_v17 = vpack.c.bf16 %v158_v9, %v158_v9  ;;  %v172_v46 = vld [vmem:[%s3385_s7 + $0xf0] sm:$0xff]  ;;  %v214_v56 = vpack.c.bf16 %v160_v44, %v160_v44  ;;  %s3252_s8 = scalar_lea.hbm %s3251_s6, 256  ;;  %p3257_p0 = scmp.lt.s32.totalorder %s3251_s6, %s4781_s2 }
  0x1d   : > { %3127 = vmatpush.bf16.msra.mxu2 %v3076_v2  ;;  %3128 = vmatpush.bf16.msra.mxu3 %v3076_v2  ;;  %v181_v12 = vld [vmem:[%s3385_s7 + $0x138] sm:$0xff]  ;;  %v182_v13 = vld [vmem:[%s3385_s7 + $0x140] sm:$0xff]  ;;  %v223_v18 = vpack.c.bf16 %v169_v10, %v169_v10  ;;  %v224_v20 = vpack.c.bf16 %v170_v11, %v170_v11  ;;  %v284_v23 = vunpack.c.l.b16 %v199_v14  ;;  %v285_v24 = vunpack.c.l.b16 %v200_v15  ;;  %v184_v48 = vld [vmem:[%s3385_s7 + $0x150] sm:$0xff]  ;;  %p3253_p11 = scmp.ne.s32.totalorder %s3251_s6, %s3252_s8  ;;  %p3258_p1 = scmp.lt.s32.totalorder %s3256_s16, %s3252_s8 }
  0x1e   : > { %v235_v21 = vpack.c.bf16 %v181_v12, %v181_v12  ;;  %v236_v22 = vpack.c.bf16 %v182_v13, %v182_v13  ;;  %v292_v25 = vunpack.c.l.b16 %v211_v16  ;;  %v293_v26 = vunpack.c.l.b16 %v212_v17  ;;  %v149_v43 = vld [vmem:[%s3385_s7 + $0x38] sm:$0xff]  ;;  %v3051_v1 = vld [vmem:[%s4780_s1 + $0x20] sm:$0xff] }
  0x1f   : > { %v300_v28 = vunpack.c.l.b16 %v223_v18  ;;  %v301_v29 = vunpack.c.l.b16 %v224_v20  ;;  %v3410_v34 = vpack.c.b16 %v285_v24, %v284_v23  ;;  %v161_v45 = vld [vmem:[%s3385_s7 + $0x98] sm:$0xff]  ;;  %v203_v55 = vpack.c.bf16 %v149_v43, %v149_v43  ;;  %v3083_v10 = vld [vmem:[%s4780_s1 + $0x120] sm:$0xff]  ;;  %v151_v20 = vld [vmem:[%s3385_s7 + $0x48] sm:$0xff]  ;;  %p3254_p12 = pnand %p3253_p11, %p3355_p5  ;;  %p3259_p2 = por %p3258_p1, %p3257_p0 }
  0x20   : > { %938 = vmatpush.bf16.msra.mxu0 %v3075_v3  ;;  %3129 = vmatpush.bf16.msra.mxu1 %v3075_v3  ;;  %v308_v30 = vunpack.c.l.b16 %v235_v21  ;;  %v309_v31 = vunpack.c.l.b16 %v236_v22  ;;  %v3412_v35 = vpack.c.b16 %v293_v26, %v292_v25  ;;  %v173_v47 = vld [vmem:[%s3385_s7 + $0xf8] sm:$0xff]  ;;  %v215_v57 = vpack.c.bf16 %v161_v45, %v161_v45  ;;  %v3059_v11 = vld [vmem:[%s4780_s1 + $0x60] sm:$0xff]  ;;  %v3089_v21 = vld [vmem:[%s4780_s1 + $0x150] sm:$0xff] }
  0x21   : > { %3130 = vmatpush.bf16.msra.mxu2 %v3075_v3  ;;  %3131 = vmatpush.bf16.msra.mxu3 %v3075_v3  ;;  %v3414_v36 = vpack.c.b16 %v301_v29, %v300_v28  ;;  %v185_v49 = vld [vmem:[%s3385_s7 + $0x158] sm:$0xff]  ;;  %v226_v58 = vpack.c.bf16 %v172_v46, %v172_v46  ;;  %v227_v59 = vpack.c.bf16 %v173_v47, %v173_v47  ;;  %v286_v2 = vunpack.c.l.b16 %v202_v54  ;;  %v3049_v22 = vld [vmem:[%s4780_s1 + $0x10] sm:$0xff]  ;;  %v163_v24 = vld [vmem:[%s3385_s7 + $0xa8] sm:$0xff]  ;;  %p3255_p13 = pneg %p3254_p12 }
  0x22   : > { %4811 = vst [vmem:[#allocation5_spill] sm:$0xff] %v3412_v35  ;;  %v3416_v37 = vpack.c.b16 %v309_v31, %v308_v30  ;;  %v238_v60 = vpack.c.bf16 %v184_v48, %v184_v48  ;;  %v239_v61 = vpack.c.bf16 %v185_v49, %v185_v49  ;;  %v287_v3 = vunpack.c.l.b16 %v203_v55  ;;  %v3090_v12 = vld [vmem:[%s4780_s1 + $0x158] sm:$0xff]  ;;  %v152_v23 = vld [vmem:[%s3385_s7 + $0x50] sm:$0xff]  ;;  %v175_v26 = vld [vmem:[%s3385_s7 + $0x108] sm:$0xff] }
  0x23   : > { %v302_v6 = vunpack.c.l.b16 %v226_v58  ;;  %v303_v7 = vunpack.c.l.b16 %v227_v59  ;;  %v3050_v13 = vld [vmem:[%s4780_s1 + $0x18] sm:$0xff]  ;;  %v164_v25 = vld [vmem:[%s3385_s7 + $0xb0] sm:$0xff]  ;;  %v187_v28 = vld [vmem:[%s3385_s7 + $0x168] sm:$0xff]  ;;  %v229_v42 = vpack.c.bf16 %v175_v26, %v175_v26  ;;  %p3260_p3 = pnand %p3259_p2, %p3255_p13 }
  0x24   : > { %939 = vmatpush.bf16.msra.mxu0 %v3074_v4  ;;  %3132 = vmatpush.bf16.msra.mxu1 %v3074_v4  ;;  %v310_v8 = vunpack.c.l.b16 %v238_v60  ;;  %v311_v9 = vunpack.c.l.b16 %v239_v61  ;;  %v3478_v14 = vpack.c.b16 %v287_v3, %v286_v2  ;;  %v3082_v18 = vld [vmem:[%s4780_s1 + $0x118] sm:$0xff]  ;;  %v188_v29 = vld [vmem:[%s3385_s7 + $0x170] sm:$0xff]  ;;  %v241_v44 = vpack.c.bf16 %v187_v28, %v187_v28  ;;  %v3080_v46 = vld [vmem:[%s4780_s1 + $0x108] sm:$0xff] }
  0x25   : > { %3133 = vmatpush.bf16.msra.mxu2 %v3074_v4  ;;  %3134 = vmatpush.bf16.msra.mxu3 %v3074_v4  ;;  %v294_v4 = vunpack.c.l.b16 %v214_v56  ;;  %v3482_v16 = vpack.c.b16 %v303_v7, %v302_v6  ;;  %v3081_v30 = vld [vmem:[%s4780_s1 + $0x110] sm:$0xff]  ;;  %v242_v45 = vpack.c.bf16 %v188_v29, %v188_v29  ;;  %v3056_v47 = vld [vmem:[%s4780_s1 + $0x48] sm:$0xff]  ;;  %v3087_v48 = vld [vmem:[%s4780_s1 + $0x140] sm:$0xff]  ;;  %v304_v54 = vunpack.c.l.b16 %v229_v42 }
  0x26   : > { %v3484_v17 = vpack.c.b16 %v311_v9, %v310_v8  ;;  %v3057_v31 = vld [vmem:[%s4780_s1 + $0x50] sm:$0xff]  ;;  %v3047_v49 = vld [vmem:[%s4780_s1] sm:$0xff]  ;;  %v312_v56 = vunpack.c.l.b16 %v241_v44  ;;  %v167_v3 = vld [vmem:[%s3385_s7 + $0xc8] sm:$0xff] }
  0x27   : > { %v3079_v58 = vld [vmem:[%s4780_s1 + $0x100] sm:$0xff]  ;;  %v191_v7 = vld [vmem:[%s3385_s7 + $0x188] sm:$0xff]  ;;  %v3102_v8 = vld [vmem:[%s4780_s1 + $0x1b8] sm:$0xff] }
  0x28   : > { %940 = vmatpush.bf16.msra.mxu0 %v3073_v5  ;;  %3135 = vmatpush.bf16.msra.mxu1 %v3073_v5  ;;  %v3055_v59 = vld [vmem:[%s4780_s1 + $0x40] sm:$0xff]  ;;  %v3110_v9 = vld [vmem:[%s4780_s1 + $0x1f8] sm:$0xff]  ;;  %v147_v28 = vld [vmem:[%s3385_s7 + $0x28] sm:$0x3] }
  0x29   : > { %3136 = vmatpush.bf16.msra.mxu2 %v3073_v5  ;;  %3137 = vmatpush.bf16.msra.mxu3 %v3073_v5  ;;  %v295_v5 = vunpack.c.l.b16 %v215_v57  ;;  %v313_v57 = vunpack.c.l.b16 %v242_v45  ;;  %v166_v2 = vld [vmem:[%s3385_s7 + $0xc0] sm:$0xff]  ;;  %v144_v29 = vld [vmem:[%s3385_s7 + $0x10] sm:$0x3]  ;;  %v201_v42 = vpack.c.bf16 %v147_v28, %v147_v28  ;;  %v153_v28 = vld [vmem:[%s3385_s7 + $0x58] sm:$0x3] }
  0x2a   : > { %v190_v6 = vld [vmem:[%s3385_s7 + $0x180] sm:$0xff]  ;;  %v198_v45 = vpack.c.bf16 %v144_v29, %v144_v29 }
  0x2b   : > { %v3480_v15 = vpack.c.b16 %v295_v5, %v294_v4  ;;  %v178_v4 = vld [vmem:[%s3385_s7 + $0x120] sm:$0xff]  ;;  %v179_v5 = vld [vmem:[%s3385_s7 + $0x128] sm:$0xff] }
  0x2c   : > { %941 = vmatpush.bf16.msra.mxu0 %v3072_v19  ;;  %3138 = vmatpush.bf16.msra.mxu1 %v3072_v19 }
  0x2d   : > { %3139 = vmatpush.bf16.msra.mxu2 %v3072_v19  ;;  %3140 = vmatpush.bf16.msra.mxu3 %v3072_v19  ;;  %4812 = vst [vmem:[#allocation6_spill] sm:$0xff] %v3480_v15  ;;  %v3058_v19 = vld [vmem:[%s4780_s1 + $0x58] sm:$0xff] }
  0x30   : > { %942 = vmatpush.bf16.msra.mxu0 %v3071_v27  ;;  %3141 = vmatpush.bf16.msra.mxu1 %v3071_v27 }
  0x31   : > { %3142 = vmatpush.bf16.msra.mxu2 %v3071_v27  ;;  %3143 = vmatpush.bf16.msra.mxu3 %v3071_v27  ;;  %v176_v27 = vld [vmem:[%s3385_s7 + $0x110] sm:$0xff] }
  0x32   : > { %v230_v43 = vpack.c.bf16 %v176_v27, %v176_v27 }
  0x33   : > { %943 = vmatmul.bf16.vlgmr.msra.gmra.mxu0 %v3410_v34  ;;  %963 = vmatmul.bf16.vlgmr.msra.gmra.mxu1 %v3412_v35 }
  0x34   : > { %983 = vmatmul.bf16.vlgmr.msra.gmra.mxu2 %v3414_v36  ;;  %1003 = vmatmul.bf16.vlgmr.msra.gmra.mxu3 %v3416_v37  ;;  %v305_v55 = vunpack.c.l.b16 %v230_v43 }
  0x35   : > { %1113 = vmatpush.bf16.msrb.mxu2 %v3094_v32  ;;  %1346 = vmatpush.bf16.msrb.mxu3 %v3054_v33  ;;  %v3088_v32 = vld [vmem:[%s4780_s1 + $0x148] sm:$0xff] }
  0x36   : > { %1024 = vmatpush.bf16.msrb.mxu1 %v3086_v38  ;;  %1435 = vmatpush.bf16.msrb.mxu0 %v3062_v39  ;;  %v3048_v33 = vld [vmem:[%s4780_s1 + $0x8] sm:$0xff]  ;;  %v205_v38 = vpack.c.bf16 %v151_v20, %v151_v20  ;;  %v206_v39 = vpack.c.bf16 %v152_v23, %v152_v23  ;;  %v220_v20 = vpack.c.bf16 %v166_v2, %v166_v2 }
  0x37   : > { %v233_v23 = vpack.c.bf16 %v179_v5, %v179_v5 }
  0x39   : > { %1114 = vmatpush.bf16.msrb.mxu2 %v3093_v40  ;;  %1347 = vmatpush.bf16.msrb.mxu3 %v3053_v41  ;;  %v217_v40 = vpack.c.bf16 %v163_v24, %v163_v24  ;;  %v218_v41 = vpack.c.bf16 %v164_v25, %v164_v25  ;;  %v244_v24 = vpack.c.bf16 %v190_v6, %v190_v6 }
  0x3a   : > { %1025 = vmatpush.bf16.msrb.mxu1 %v3085_v50  ;;  %1436 = vmatpush.bf16.msrb.mxu0 %v3061_v51  ;;  %v288_v50 = vunpack.c.l.b16 %v205_v38  ;;  %v289_v51 = vunpack.c.l.b16 %v206_v39  ;;  %v245_v25 = vpack.c.bf16 %v191_v7, %v191_v7  ;;  %v307_v39 = vunpack.c.l.b16 %v233_v23  ;;  %v3069_v23 = vld [vmem:[%s4780_s1 + $0xb0] sm:$0xff] }
  0x3c   : > { %v3540_v60 = vpack.c.b16 %v289_v51, %v288_v50  ;;  %v363_v50 = vunpack.c.l.b16 %v201_v42 }
  0x3d   : > { %1115 = vmatpush.bf16.msrb.mxu2 %v3092_v52  ;;  %1348 = vmatpush.bf16.msrb.mxu3 %v3052_v53  ;;  %v296_v52 = vunpack.c.l.b16 %v217_v40  ;;  %v297_v53 = vunpack.c.l.b16 %v218_v41  ;;  %v718_v40 = vunpack.c.l.b16 %v244_v24  ;;  %v719_v41 = vunpack.c.l.b16 %v245_v25  ;;  %v3117_v24 = vld [vmem:[%s4780_s1 + $0x230] sm:$0xff] }
  0x3e   : > { %1026 = vmatpush.bf16.msrb.mxu1 %v3084_v62  ;;  %1437 = vmatpush.bf16.msrb.mxu0 %v3060_v63  ;;  %v3544_v62 = vpack.c.b16 %v305_v55, %v304_v54  ;;  %v3546_v63 = vpack.c.b16 %v313_v57, %v312_v56  ;;  %v379_v54 = vpack.c.b16 %v363_v50, %v363_v50  ;;  %v408_v57 = vshrl.u32 %v3410_v34, 16  ;;  %v156_v50 = vld [vmem:[%s3385_s7 + $0x70] sm:$0x3] }
  0x3f   : > { %v3542_v61 = vpack.c.b16 %v297_v53, %v296_v52  ;;  %v362_v52 = vunpack.c.l.b16 %v198_v45  ;;  %v410_v53 = vshll.u32 %v3410_v34, 16  ;;  %v420_v25 = vshrl.u32 %v3478_v14, 16 }
  0x40   : > { %v434_v42 = vshll.u32 %v3540_v60, 16 }
  0x41   : > { %1116 = vmatpush.bf16.msrb.mxu2 %v3091_v0  ;;  %1349 = vmatpush.bf16.msrb.mxu3 %v3051_v1  ;;  %4813 = vst [vmem:[#allocation7_spill] sm:$0xff] %v3542_v61  ;;  %v154_v0 = vld [vmem:[%s3385_s7 + $0x60] sm:$0xff]  ;;  %v155_v1 = vld [vmem:[%s3385_s7 + $0x68] sm:$0xff]  ;;  %v3591_v55 = vpack.c.b16 %v362_v52, %v362_v52 }
  0x42   : > { %1027 = vmatpush.bf16.msrb.mxu1 %v3083_v10  ;;  %1438 = vmatpush.bf16.msrb.mxu0 %v3059_v11  ;;  %v3070_v10 = vld [vmem:[%s4780_s1 + $0xb8] sm:$0xff]  ;;  %v208_v11 = vpack.c.bf16 %v154_v0, %v154_v0 }
  0x43   : > { %948 = vmatmul.bf16.gmra.mxu0 %v3478_v14  ;;  %968 = vmatmul.bf16.gmra.mxu1 %v3480_v15  ;;  %v403_v2 = vshll.u32 %v3591_v55, 16 }
  0x44   : > { %988 = vmatmul.bf16.gmra.mxu2 %v3482_v16  ;;  %1008 = vmatmul.bf16.gmra.mxu3 %v3484_v17 }
  0x45   : > { %1117 = vmatpush.bf16.msrb.mxu2 %v3090_v12  ;;  %1350 = vmatpush.bf16.msrb.mxu3 %v3050_v13  ;;  %v209_v12 = vpack.c.bf16 %v155_v1, %v155_v1  ;;  %v142_v13 = vld [vmem:[%s3385_s7] sm:$0xff]  ;;  %v405_v7 = vrot.slane %v403_v2, 1  ;;  %v3100_v2 = vld [vmem:[%s4780_s1 + $0x1a8] sm:$0xff] }
  0x46   : > { %1028 = vmatpush.bf16.msrb.mxu1 %v3082_v18  ;;  %1439 = vmatpush.bf16.msrb.mxu0 %v3058_v19  ;;  %v143_v18 = vld [vmem:[%s3385_s7 + $0x8] sm:$0xff]  ;;  %v3118_v19 = vld [vmem:[%s4780_s1 + $0x238] sm:$0xff]  ;;  %v196_v26 = vpack.c.bf16 %v142_v13, %v142_v13 }
  0x47   : > { %v197_v27 = vpack.c.bf16 %v143_v18, %v143_v18 }
  0x48   : > { %v282_v43 = vunpack.c.l.b16 %v196_v26 }
  0x49   : > { %1118 = vmatpush.bf16.msrb.mxu2 %v3089_v21  ;;  %1351 = vmatpush.bf16.msrb.mxu3 %v3049_v22  ;;  %v221_v21 = vpack.c.bf16 %v167_v3, %v167_v3  ;;  %v232_v22 = vpack.c.bf16 %v178_v4, %v178_v4  ;;  %v283_v44 = vunpack.c.l.b16 %v197_v27  ;;  %v150_v3 = vld [vmem:[%s3385_s7 + $0x40] sm:$0x3] }
  0x4a   : > { %1029 = vmatpush.bf16.msrb.mxu1 %v3081_v30  ;;  %1440 = vmatpush.bf16.msrb.mxu0 %v3057_v31  ;;  %v290_v30 = vunpack.c.l.b16 %v208_v11  ;;  %v291_v31 = vunpack.c.l.b16 %v209_v12 }
  0x4b   : > { %v306_v38 = vunpack.c.l.b16 %v232_v22  ;;  %v3584_v51 = vpack.c.b16 %v283_v44, %v282_v43  ;;  %v3109_v22 = vld [vmem:[%s4780_s1 + $0x1f0] sm:$0xff]  ;;  %v432_v43 = vshrl.u32 %v3540_v60, 16  ;;  %v436_v44 = vrot.slane %v434_v42, 1 }
  0x4d   : > { %1119 = vmatpush.bf16.msrb.mxu2 %v3088_v32  ;;  %1352 = vmatpush.bf16.msrb.mxu3 %v3048_v33  ;;  %v298_v32 = vunpack.c.l.b16 %v220_v20  ;;  %v299_v33 = vunpack.c.l.b16 %v221_v21  ;;  %v398_v56 = vshll.u32 %v3584_v51, 16  ;;  %v396_v0 = vshrl.u32 %v3584_v51, 16  ;;  %v3101_v21 = vld [vmem:[%s4780_s1 + $0x1b0] sm:$0xff] }
  0x4e   : > { %1030 = vmatpush.bf16.msrb.mxu1 %v3080_v46  ;;  %1441 = vmatpush.bf16.msrb.mxu0 %v3056_v47  ;;  %v3576_v46 = vpack.c.b16 %v291_v31, %v290_v30  ;;  %v422_v20 = vshll.u32 %v3478_v14, 16  ;;  %v207_v31 = vpack.c.bf16 %v153_v28, %v153_v28  ;;  %v437_v52 = vor.u32 %v436_v44, %v432_v43  ;;  %v162_v28 = vld [vmem:[%s3385_s7 + $0xa0] sm:$0x3] }
  0x4f   : > { %v3578_v47 = vpack.c.b16 %v299_v33, %v298_v32  ;;  %v400_v1 = vrot.slane %v398_v56, 1  ;;  %v610_v32 = vrot.slane %v3478_v14, 1  ;;  %v613_v56 = vrot.slane %v3540_v60, 1 }
  0x50   : > { %v424_v26 = vrot.slane %v422_v20, 1 }
  0x51   : > { %1120 = vmatpush.bf16.msrb.mxu2 %v3087_v48  ;;  %1353 = vmatpush.bf16.msrb.mxu3 %v3047_v49  ;;  %4814 = vst [vmem:[#allocation8_spill] sm:$0xff] %v3578_v47  ;;  %v3580_v48 = vpack.c.b16 %v307_v39, %v306_v38  ;;  %v3582_v49 = vpack.c.b16 %v719_v41, %v718_v40  ;;  %v365_v39 = vunpack.c.l.b16 %v207_v31 }
  0x52   : > { %1031 = vmatpush.bf16.msrb.mxu1 %v3079_v58  ;;  %1442 = vmatpush.bf16.msrb.mxu0 %v3055_v59  ;;  %v412_v58 = vrot.slane %v410_v53, 1  ;;  %v415_v59 = vshll.u32 %v379_v54, 16  ;;  %v401_v6 = vor.u32 %v400_v1, %v396_v0  ;;  %v425_v29 = vor.u32 %v424_v26, %v420_v25 }
  0x53   : > { %953 = vmatmul.bf16.gmra.mxu0 %v3540_v60  ;;  %973 = vmatmul.bf16.gmra.mxu1 %v3542_v61  ;;  %v381_v41 = vpack.c.b16 %v365_v39, %v365_v39  ;;  %v446_v1 = vshll.u32 %v3576_v46, 16  ;;  %v456_v25 = vshrl.u32 %v3412_v35, 16  ;;  %v216_v31 = vpack.c.bf16 %v162_v28, %v162_v28 }
  0x54   : > { %993 = vmatmul.bf16.gmra.mxu2 %v3544_v62  ;;  %1013 = vmatmul.bf16.gmra.mxu3 %v3546_v63  ;;  %v413_v4 = vor.u32 %v412_v58, %v408_v57  ;;  %v417_v5 = vrot.slane %v415_v59, 1  ;;  %v406_v12 = vsel %vm394_vm0, %v401_v6, %v405_v7  ;;  %v3068_v7 = vld [vmem:[%s4780_s1 + $0xa8] sm:$0xff] }
  0x55   : > { %1832 = vmatpush.bf16.msra.mxu2 %v3102_v8  ;;  %1921 = vmatpush.bf16.msra.mxu3 %v3110_v9  ;;  %v204_v8 = vpack.c.bf16 %v150_v3, %v150_v3  ;;  %v607_v9 = vrot.slane %v3410_v34, 1  ;;  %v439_v45 = vshll.u32 %v381_v41, 16  ;;  %v614_v57 = vrot.slane %v381_v41, 1  ;;  %v3108_v3 = vld [vmem:[%s4780_s1 + $0x1e8] sm:$0xff] }
  0x56   : > { %1524 = vmatpush.bf16.msra.mxu1 %v3070_v10  ;;  %2010 = vmatpush.bf16.msra.mxu0 %v3118_v19  ;;  %v608_v10 = vrot.slane %v379_v54, 1  ;;  %v418_v11 = vsel %vm394_vm0, %v413_v4, %v417_v5  ;;  %v210_v54 = vpack.c.bf16 %v156_v50, %v156_v50  ;;  %v444_v4 = vshrl.u32 %v3576_v46, 16 }
  0x57   : > { %v364_v13 = vunpack.c.l.b16 %v204_v8  ;;  %v441_v53 = vrot.slane %v439_v45, 1  ;;  %v448_v5 = vrot.slane %v446_v1, 1  ;;  %v3116_v8 = vld [vmem:[%s4780_s1 + $0x228] sm:$0xff]  ;;  %v368_v43 = vunpack.c.l.b16 %v216_v31 }
  0x58   : > { %v3602_v18 = vsel %vm603_vm1, %v607_v9, %v608_v10  ;;  %v366_v59 = vunpack.c.l.b16 %v210_v54  ;;  %v159_v9 = vld [vmem:[%s3385_s7 + $0x88] sm:$0x3]  ;;  %v470_v50 = vshll.u32 %v3480_v15, 16  ;;  %v480_v31 = vshrl.u32 %v3542_v61, 16 }
  0x59   : > { %v380_v19 = vpack.c.b16 %v364_v13, %v364_v13  ;;  %1833 = vmatpush.bf16.msra.mxu2 %v3101_v21  ;;  %1922 = vmatpush.bf16.msra.mxu3 %v3109_v22  ;;  %v3636_v58 = vsel %vm394_vm0, %v437_v52, %v441_v53  ;;  %v449_v10 = vor.u32 %v448_v5, %v444_v4  ;;  %v616_v13 = vrot.slane %v3576_v46, 1  ;;  %v3099_v52 = vld [vmem:[%s4780_s1 + $0x1a0] sm:$0xff]  ;;  %v165_v5 = vld [vmem:[%s3385_s7 + $0xb8] sm:$0x3] }
  0x5a   : > { %1525 = vmatpush.bf16.msra.mxu1 %v3069_v23  ;;  %2011 = vmatpush.bf16.msra.mxu0 %v3117_v24  ;;  %v382_v0 = vpack.c.b16 %v366_v59, %v366_v59  ;;  %v458_v24 = vshll.u32 %v3412_v35, 16  ;;  %v384_v45 = vpack.c.b16 %v368_v43, %v368_v43  ;;  %v3107_v53 = vld [vmem:[%s4780_s1 + $0x1e0] sm:$0xff]  ;;  %v472_v1 = vrot.slane %v470_v50, 1  ;;  %v168_v43 = vld [vmem:[%s3385_s7 + $0xd0] sm:$0x3] }
  0x5b   : > { %v427_v27 = vshll.u32 %v380_v19, 16  ;;  %v611_v33 = vrot.slane %v380_v19, 1  ;;  %v3115_v4 = vld [vmem:[%s4780_s1 + $0x220] sm:$0xff] }
  0x5c   : > { %v451_v6 = vshll.u32 %v382_v0, 16  ;;  %v617_v19 = vrot.slane %v382_v0, 1  ;;  %v460_v26 = vrot.slane %v458_v24, 1  ;;  %v468_v0 = vshrl.u32 %v3480_v15, 16 }
  0x5d   : > { %v429_v30 = vrot.slane %v427_v27, 1  ;;  %v3626_v40 = vsel %vm603_vm1, %v610_v32, %v611_v33  ;;  %1834 = vmatpush.bf16.msra.mxu2 %v3100_v2  ;;  %1923 = vmatpush.bf16.msra.mxu3 %v3108_v3  ;;  %v619_v32 = vrot.slane %v3412_v35, 1  ;;  %v475_v2 = vshll.u32 %v384_v45, 16  ;;  %v3067_v3 = vld [vmem:[%s4780_s1 + $0xa0] sm:$0xff] }
  0x5e   : > { %1526 = vmatpush.bf16.msra.mxu1 %v3068_v7  ;;  %2012 = vmatpush.bf16.msra.mxu0 %v3116_v8  ;;  %v3665_v22 = vsel %vm603_vm1, %v616_v13, %v617_v19  ;;  %v219_v8 = vpack.c.bf16 %v165_v5, %v165_v5 }
  0x5f   : > { %v3623_v38 = vsel %vm394_vm0, %v425_v29, %v429_v30  ;;  %v461_v29 = vor.u32 %v460_v26, %v456_v25  ;;  %v477_v7 = vrot.slane %v475_v2, 1  ;;  %v482_v26 = vshll.u32 %v3542_v61, 16 }
  0x61   : > { %1835 = vmatpush.bf16.msra.mxu2 %v3099_v52  ;;  %1924 = vmatpush.bf16.msra.mxu3 %v3107_v53  ;;  %v222_v52 = vpack.c.bf16 %v168_v43, %v168_v43  ;;  %v625_v53 = vrot.slane %v3542_v61, 1 }
  0x62   : > { %1527 = vmatpush.bf16.msra.mxu1 %v3067_v3  ;;  %2013 = vmatpush.bf16.msra.mxu0 %v3115_v4 }
  0x63   : > { %958 = vmatmul.bf16.gmra.mxu0 %v3576_v46  ;;  %978 = vmatmul.bf16.gmra.mxu1 %v3578_v47 }
  0x64   : > { %998 = vmatmul.bf16.gmra.mxu2 %v3580_v48  ;;  %1018 = vmatmul.bf16.gmra.mxu3 %v3582_v49 }
  0x73   : > { %1032 = vmatmul.bf16.vlgmr.msrb.gmra.mxu1 %v418_v11  ;;  %1443 = vmatmul.bf16.vlgmr.msrb.gmra.mxu0 %v406_v12  ;;  %v213_v12 = vpack.c.bf16 %v159_v9, %v159_v9  ;;  %v622_v9 = vrot.slane %v3480_v15, 1 }
  0x74   : > { %1121 = vmatmul.bf16.vlgmr.msrb.gmra.mxu2 %v3602_v18  ;;  %1354 = vmatmul.bf16.vlgmr.msrb.gmra.mxu3 %v3584_v51 }
  0x75   : > { %v367_v21 = vunpack.c.l.b16 %v213_v12 }
  0x77   : > { %v383_v23 = vpack.c.b16 %v367_v21, %v367_v21 }
  0x79   : > { %v463_v27 = vshll.u32 %v383_v23, 16  ;;  %v620_v33 = vrot.slane %v383_v23, 1  ;;  %v369_v23 = vunpack.c.l.b16 %v219_v8 }
  0x7b   : > { %v465_v30 = vrot.slane %v463_v27, 1  ;;  %v3683_v44 = vsel %vm603_vm1, %v619_v32, %v620_v33  ;;  %v385_v25 = vpack.c.b16 %v369_v23, %v369_v23  ;;  %v484_v32 = vrot.slane %v482_v26, 1  ;;  %v3106_v23 = vld [vmem:[%s4780_s1 + $0x1d8] sm:$0xff] }
  0x7c   : > { %4816 = vst [vmem:[#allocation10_spill] sm:$0xff] %v3683_v44  ;;  %1925 = vmatpush.bf16.msra.mxu3 %v3106_v23  ;;  %v628_v23 = vrot.slane %v3578_v47, 1 }
  0x7d   : > { %v3680_v42 = vsel %vm394_vm0, %v461_v29, %v465_v30  ;;  %v487_v33 = vshll.u32 %v385_v25, 16 }
  0x7e   : > { %4815 = vst [vmem:[#allocation9_spill] sm:$0xff] %v3680_v42 }
  0x7f   : > { %v489_v50 = vrot.slane %v487_v33, 1  ;;  %v492_v33 = vshrl.u32 %v3578_v47, 16 }
  0x83   : > { %1037 = vmatmul.bf16.gmra.mxu1 %v3623_v38  ;;  %1448 = vmatmul.bf16.gmra.mxu0 %v418_v11  ;;  %v453_v11 = vrot.slane %v451_v6, 1  ;;  %v473_v6 = vor.u32 %v472_v1, %v468_v0  ;;  %v626_v0 = vrot.slane %v385_v25, 1 }
  0x84   : > { %1126 = vmatmul.bf16.gmra.mxu2 %v3626_v40  ;;  %1359 = vmatmul.bf16.gmra.mxu3 %v3410_v34  ;;  %v3639_v34 = vsel %vm603_vm1, %v613_v56, %v614_v57 }
  0x85   : > { %v3662_v20 = vsel %vm394_vm0, %v449_v10, %v453_v11  ;;  %v623_v10 = vrot.slane %v384_v45, 1  ;;  %v3722_v21 = vsel %vm394_vm0, %v473_v6, %v477_v7  ;;  %v485_v45 = vor.u32 %v484_v32, %v480_v31 }
  0x86   : > { %4819 = vst [vmem:[#allocation13_spill] sm:$0xff] %v3722_v21  ;;  %v370_v6 = vunpack.c.l.b16 %v222_v52  ;;  %v3755_v7 = vsel %vm603_vm1, %v625_v53, %v626_v0  ;;  %v3066_v52 = vld [vmem:[%s4780_s1 + $0x98] sm:$0xff] }
  0x87   : > { %v3725_v24 = vsel %vm603_vm1, %v622_v9, %v623_v10  ;;  %v3752_v5 = vsel %vm394_vm0, %v485_v45, %v489_v50  ;;  %4824 = vst [vmem:[#allocation18_spill] sm:$0xff] %v3755_v7  ;;  %v494_v9 = vshll.u32 %v3578_v47, 16  ;;  %v3098_v10 = vld [vmem:[%s4780_s1 + $0x198] sm:$0xff]  ;;  %v171_v50 = vld [vmem:[%s3385_s7 + $0xe8] sm:$0x3]  ;;  %1528 = vmatpush.bf16.msra.mxu1 %v3066_v52 }
  0x88   : > { %4820 = vst [vmem:[#allocation14_spill] sm:$0xff] %v3725_v24  ;;  %v386_v8 = vpack.c.b16 %v370_v6, %v370_v6  ;;  %1836 = vmatpush.bf16.msra.mxu2 %v3098_v10  ;;  %v3114_v53 = vld [vmem:[%s4780_s1 + $0x218] sm:$0xff]  ;;  %v225_v10 = vpack.c.bf16 %v171_v50, %v171_v50 }
  0x89   : > { %4823 = vst [vmem:[#allocation17_spill] sm:$0xff] %v3752_v5  ;;  %v496_v43 = vrot.slane %v494_v9, 1  ;;  %2014 = vmatpush.bf16.msra.mxu0 %v3114_v53 }
  0x8a   : > { %v499_v45 = vshll.u32 %v386_v8, 16 }
  0x8b   : > { %v497_v0 = vor.u32 %v496_v43, %v492_v33  ;;  %v371_v33 = vunpack.c.l.b16 %v225_v10 }
  0x8c   : > { %v501_v6 = vrot.slane %v499_v45, 1  ;;  %v506_v45 = vshll.u32 %v3414_v36, 16 }
  0x93   : > { %1042 = vmatmul.bf16.gmra.mxu1 %v3636_v58  ;;  %1453 = vmatmul.bf16.gmra.mxu0 %v3623_v38 }
  0x94   : > { %1131 = vmatmul.bf16.gmra.mxu2 %v3639_v34  ;;  %1364 = vmatmul.bf16.gmra.mxu3 %v3478_v14 }
  0xa3   : > { %1047 = vmatmul.bf16.gmra.mxu1 %v3662_v20  ;;  %1458 = vmatmul.bf16.gmra.mxu0 %v3636_v58 }
  0xa4   : > { %1136 = vmatmul.bf16.gmra.mxu2 %v3665_v22  ;;  %1369 = vmatmul.bf16.gmra.mxu3 %v3540_v60 }
  0xb0   : > { %v3675_v39 = vpop.f32.mrf.mxu0  ;;  %v3677_v41 = vpop.f32.mrf.mxu1 }
  0xb3   : > { %1052 = vmatmul.bf16.gmra.mxu1 %v3680_v42  ;;  %1463 = vmatmul.bf16.gmra.mxu0 %v3662_v20 }
  0xb4   : > { %1141 = vmatmul.bf16.gmra.mxu2 %v3683_v44  ;;  %1374 = vmatmul.bf16.gmra.mxu3 %v3576_v46 }
  0xb7   : > { %v3696_v54 = vpop.f32.mrf.mxu2  ;;  %v3698_v56 = vpop.f32.mrf.mxu3 }
  0xb8   : > { %4817 = vst [vmem:[#allocation11_spill] sm:$0xff] %v3698_v56  ;;  %v3700_v57 = vpop.f32.mrf.mxu0  ;;  %v3702_v59 = vpop.f32.mrf.mxu1 }
  0xbf   : > { %v3713_v11 = vpop.f32.mrf.mxu2  ;;  %v3715_v12 = vpop.f32.mrf.mxu3 }
  0xc0   : > { %4818 = vst [vmem:[#allocation12_spill] sm:$0xff] %v3715_v12  ;;  %v3717_v13 = vpop.f32.mrf.mxu0  ;;  %v3719_v19 = vpop.f32.mrf.mxu1  ;;  %v3794_v12 = vsel %vm394_vm0, %v497_v0, %v501_v6  ;;  %v508_v6 = vrot.slane %v506_v45, 1 }
  0xc1   : > { %4828 = vst [vmem:[#allocation22_spill] sm:$0xff] %v3794_v12 }
  0xc3   : > { %1057 = vmatmul.bf16.gmra.mxu1 %v3722_v21  ;;  %1468 = vmatmul.bf16.gmra.mxu0 %v3680_v42 }
  0xc4   : > { %1146 = vmatmul.bf16.gmra.mxu2 %v3725_v24  ;;  %1379 = vmatmul.bf16.gmra.mxu3 %v3412_v35 }
  0xc7   : > { %v3732_v27 = vpop.f32.mrf.mxu2  ;;  %v3734_v28 = vpop.f32.mrf.mxu3 }
  0xc8   : > { %4821 = vst [vmem:[#allocation15_spill] sm:$0xff] %v3734_v28  ;;  %v3736_v29 = vpop.f32.mrf.mxu0  ;;  %v3738_v30 = vpop.f32.mrf.mxu1 }
  0xcf   : > { %v3743_v1 = vpop.f32.mrf.mxu2  ;;  %v3745_v2 = vpop.f32.mrf.mxu3 }
  0xd0   : > { %4822 = vst [vmem:[#allocation16_spill] sm:$0xff] %v3745_v2  ;;  %v3747_v3 = vpop.f32.mrf.mxu0  ;;  %v3749_v4 = vpop.f32.mrf.mxu1 }
  0xd3   : > { %1062 = vmatmul.bf16.gmra.mxu1 %v3752_v5  ;;  %1473 = vmatmul.bf16.gmra.mxu0 %v3722_v21 }
  0xd4   : > { %1151 = vmatmul.bf16.gmra.mxu2 %v3755_v7  ;;  %1384 = vmatmul.bf16.gmra.mxu3 %v3480_v15 }
  0xd7   : > { %v3768_v25 = vpop.f32.mrf.mxu2  ;;  %v3770_v26 = vpop.f32.mrf.mxu3 }
  0xd8   : > { %4825 = vst [vmem:[#allocation19_spill] sm:$0xff] %v3770_v26  ;;  %v3772_v31 = vpop.f32.mrf.mxu0  ;;  %v3774_v32 = vpop.f32.mrf.mxu1  ;;  %v629_v26 = vrot.slane %v386_v8, 1  ;;  %v387_v8 = vpack.c.b16 %v371_v33, %v371_v33  ;;  %v631_v33 = vrot.slane %v3414_v36, 1 }
  0xda   : > { %v3797_v43 = vsel %vm603_vm1, %v628_v23, %v629_v26  ;;  %v504_v26 = vshrl.u32 %v3414_v36, 16  ;;  %v511_v10 = vshll.u32 %v387_v8, 16  ;;  %v174_v23 = vld [vmem:[%s3385_s7 + $0x100] sm:$0x3] }
  0xdb   : > { %4829 = vst [vmem:[#allocation23_spill] sm:$0xff] %v3797_v43 }
  0xdf   : > { %v3785_v2 = vpop.f32.mrf.mxu2  ;;  %v3787_v9 = vpop.f32.mrf.mxu3 }
  0xe0   : > { %4826 = vst [vmem:[#allocation20_spill] sm:$0xff] %v3785_v2  ;;  %v3789_v28 = vpop.f32.mrf.mxu0  ;;  %v3791_v7 = vpop.f32.mrf.mxu1 }
  0xe1   : > { %4827 = vst [vmem:[#allocation21_spill] sm:$0xff] %v3787_v9  ;;  %v509_v9 = vor.u32 %v508_v6, %v504_v26  ;;  %v518_v26 = vshll.u32 %v3482_v16, 16 }
  0xe3   : > { %1067 = vmatmul.bf16.gmra.mxu1 %v3794_v12  ;;  %1478 = vmatmul.bf16.gmra.mxu0 %v3752_v5  ;;  %v228_v5 = vpack.c.bf16 %v174_v23, %v174_v23 }
  0xe4   : > { %1156 = vmatmul.bf16.gmra.mxu2 %v3797_v43  ;;  %1389 = vmatmul.bf16.gmra.mxu3 %v3542_v61  ;;  %v513_v43 = vrot.slane %v511_v10, 1  ;;  %v632_v61 = vrot.slane %v387_v8, 1  ;;  %v516_v10 = vshrl.u32 %v3482_v16, 16 }
  0xe6   : > { %v3820_v24 = vsel %vm394_vm0, %v509_v9, %v513_v43  ;;  %v3824_v42 = vsel %vm603_vm1, %v631_v33, %v632_v61  ;;  %v3105_v61 = vld [vmem:[%s4780_s1 + $0x1d0] sm:$0xff] }
  0xe7   : > { %v3804_v50 = vpop.f32.mrf.mxu2  ;;  %v3806_v52 = vpop.f32.mrf.mxu3  ;;  %4834 = vst [vmem:[#allocation28_spill] sm:$0xff] %v3820_v24  ;;  %1926 = vmatpush.bf16.msra.mxu3 %v3105_v61 }
  0xe8   : > { %4830 = vst [vmem:[#allocation24_spill] sm:$0xff] %v3804_v50  ;;  %v3808_v53 = vpop.f32.mrf.mxu0  ;;  %v3810_v0 = vpop.f32.mrf.mxu1  ;;  %v372_v50 = vunpack.c.l.b16 %v228_v5  ;;  %v3097_v5 = vld [vmem:[%s4780_s1 + $0x190] sm:$0xff] }
  0xe9   : > { %4831 = vst [vmem:[#allocation25_spill] sm:$0xff] %v3806_v52  ;;  %1837 = vmatpush.bf16.msra.mxu2 %v3097_v5  ;;  %v3113_v5 = vld [vmem:[%s4780_s1 + $0x210] sm:$0xff] }
  0xea   : > { %4835 = vst [vmem:[#allocation29_spill] sm:$0xff] %v3824_v42  ;;  %v388_v8 = vpack.c.b16 %v372_v50, %v372_v50  ;;  %v520_v50 = vrot.slane %v518_v26, 1  ;;  %2015 = vmatpush.bf16.msra.mxu0 %v3113_v5  ;;  %v634_v26 = vrot.slane %v3482_v16, 1  ;;  %v528_v5 = vshrl.u32 %v3544_v62, 16 }
  0xec   : > { %v523_v23 = vshll.u32 %v388_v8, 16  ;;  %v521_v61 = vor.u32 %v520_v50, %v516_v10 }
  0xef   : > { %v3815_v56 = vpop.f32.mrf.mxu2  ;;  %v3817_v21 = vpop.f32.mrf.mxu3 }
  0xf0   : > { %4832 = vst [vmem:[#allocation26_spill] sm:$0xff] %v3815_v56  ;;  %v1033_v52 = vpop.f32.mrf.mxu1  ;;  %v1444_v15 = vpop.f32.mrf.mxu0 }
  0xf1   : > { %4833 = vst [vmem:[#allocation27_spill] sm:$0xff] %v3817_v21  ;;  %v1034_v45 = vadd.f32 %v1033_v52, %v3675_v39  ;;  %v177_v21 = vld [vmem:[%s3385_s7 + $0x118] sm:$0x3] }
  0xf3   : > { %1072 = vmatmul.bf16.gmra.mxu1 %v3820_v24  ;;  %1483 = vmatmul.bf16.gmra.mxu0 %v3794_v12  ;;  %v3065_v12 = vld [vmem:[%s4780_s1 + $0x90] sm:$0xff] }
  0xf4   : > { %1161 = vmatmul.bf16.gmra.mxu2 %v3824_v42  ;;  %1394 = vmatmul.bf16.gmra.mxu3 %v3578_v47 }
  0xf5   : > { %1529 = vmatpush.bf16.msra.mxu1 %v3065_v12 }
  0xf7   : > { %v1122_v39 = vpop.f32.mrf.mxu2  ;;  %v1355_v9 = vpop.f32.mrf.mxu3 }
  0xf8   : > { %v1123_v43 = vadd.f32 %v1122_v39, %v1034_v45  ;;  %v1035_v52 = vpop.f32.mrf.mxu1  ;;  %v1446_v6 = vpop.f32.mrf.mxu0  ;;  %v525_v45 = vrot.slane %v523_v23, 1  ;;  %v231_v39 = vpack.c.bf16 %v177_v21, %v177_v21 }
  0xf9   : > { %v1036_v33 = vadd.f32 %v1035_v52, %v3700_v57  ;;  %v635_v57 = vrot.slane %v388_v8, 1 }
  0xfa   : > { %v1356_v42 = vadd.f32 %v1355_v9, %v1123_v43  ;;  %v3850_v44 = vsel %vm394_vm0, %v521_v61, %v525_v45  ;;  %v373_v2 = vunpack.c.l.b16 %v231_v39 }
  0xfb   : > { %v3854_v21 = vsel %vm603_vm1, %v634_v26, %v635_v57  ;;  %v180_v26 = vld [vmem:[%s3385_s7 + $0x130] sm:$0x3] }
  0xfc   : > { %v3846_v47 = vadd.f32 %v1444_v15, %v1356_v42  ;;  %4837 = vst [vmem:[#allocation31_spill] sm:$0xff] %v3854_v21  ;;  %v389_v15 = vpack.c.b16 %v373_v2, %v373_v2  ;;  %v530_v42 = vshll.u32 %v3544_v62, 16  ;;  %v234_v2 = vpack.c.bf16 %v180_v26, %v180_v26 }
  0xfe   : > { %4836 = vst [vmem:[#allocation30_spill] sm:$0xff] %v3846_v47  ;;  %v532_v61 = vrot.slane %v530_v42, 1  ;;  %v535_v45 = vshll.u32 %v389_v15, 16 }
  0xff   : > { %v1124_v52 = vpop.f32.mrf.mxu2  ;;  %v1357_v9 = vpop.f32.mrf.mxu3 }
 0x100   : > { %v1125_v43 = vadd.f32 %v1124_v52, %v1036_v33  ;;  %v1038_v56 = vpop.f32.mrf.mxu1  ;;  %v1449_v35 = vpop.f32.mrf.mxu0  ;;  %v533_v52 = vor.u32 %v532_v61, %v528_v5 }
 0x101   : > { %v1039_v10 = vadd.f32 %v1038_v56, %v3717_v13 }
 0x102   : > { %v1358_v12 = vadd.f32 %v1357_v9, %v1125_v43  ;;  %v537_v9 = vrot.slane %v535_v45, 1 }
 0x103   : > { %1077 = vmatmul.bf16.gmra.mxu1 %v3850_v44  ;;  %1488 = vmatmul.bf16.gmra.mxu0 %v3820_v24  ;;  %v374_v24 = vunpack.c.l.b16 %v234_v2 }
 0x104   : > { %1166 = vmatmul.bf16.gmra.mxu2 %v3854_v21  ;;  %1399 = vmatmul.bf16.gmra.mxu3 %v3414_v36  ;;  %v3861_v8 = vadd.f32 %v1446_v6, %v1358_v12  ;;  %v637_v6 = vrot.slane %v3544_v62, 1  ;;  %v638_v12 = vrot.slane %v389_v15, 1  ;;  %v3870_v42 = vsel %vm394_vm0, %v533_v52, %v537_v9  ;;  %v183_v9 = vld [vmem:[%s3385_s7 + $0x148] sm:$0x3] }
 0x105   : > { %v542_v15 = vshll.u32 %v3580_v48, 16 }
 0x106   : > { %4838 = vst [vmem:[#allocation32_spill] sm:$0xff] %v3861_v8 }
 0x107   : > { %v1127_v50 = vpop.f32.mrf.mxu2  ;;  %v1360_v56 = vpop.f32.mrf.mxu3  ;;  %v544_v26 = vrot.slane %v542_v15, 1 }
 0x108   : > { %v1128_v13 = vadd.f32 %v1127_v50, %v1039_v10  ;;  %v1040_v23 = vpop.f32.mrf.mxu1  ;;  %v1451_v33 = vpop.f32.mrf.mxu0 }
 0x109   : > { %v1041_v39 = vadd.f32 %v1040_v23, %v3736_v29 }
 0x10a   : > { %v1361_v57 = vadd.f32 %v1360_v56, %v1128_v13  ;;  %v3874_v56 = vsel %vm603_vm1, %v637_v6, %v638_v12  ;;  %v3112_v6 = vld [vmem:[%s4780_s1 + $0x208] sm:$0xff] }
 0x10b   : > { %2016 = vmatpush.bf16.msra.mxu0 %v3112_v6 }
 0x10c   : > { %v3866_v43 = vadd.f32 %v1449_v35, %v1361_v57  ;;  %v390_v35 = vpack.c.b16 %v374_v24, %v374_v24 }
 0x10e   : > { %v547_v57 = vshll.u32 %v390_v35, 16 }
 0x10f   : > { %v1129_v8 = vpop.f32.mrf.mxu2  ;;  %v1362_v10 = vpop.f32.mrf.mxu3 }
 0x110   : > { %v1130_v50 = vadd.f32 %v1129_v8, %v1041_v39  ;;  %v1043_v21 = vpop.f32.mrf.mxu1  ;;  %v1454_v47 = vpop.f32.mrf.mxu0  ;;  %v540_v39 = vshrl.u32 %v3580_v48, 16 }
 0x111   : > { %v1044_v29 = vadd.f32 %v1043_v21, %v3747_v3  ;;  %v3096_v3 = vld [vmem:[%s4780_s1 + $0x188] sm:$0xff] }
 0x112   : > { %v1363_v13 = vadd.f32 %v1362_v10, %v1130_v50  ;;  %v3104_v21 = vld [vmem:[%s4780_s1 + $0x1c8] sm:$0xff]  ;;  %1838 = vmatpush.bf16.msra.mxu2 %v3096_v3  ;;  %v545_v12 = vor.u32 %v544_v26, %v540_v39  ;;  %v549_v10 = vrot.slane %v547_v57, 1  ;;  %v237_v50 = vpack.c.bf16 %v183_v9, %v183_v9 }
 0x113   : > { %1082 = vmatmul.bf16.gmra.mxu1 %v3870_v42  ;;  %1493 = vmatmul.bf16.gmra.mxu0 %v3850_v44 }
 0x114   : > { %1171 = vmatmul.bf16.gmra.mxu2 %v3874_v56  ;;  %1404 = vmatmul.bf16.gmra.mxu3 %v3482_v16  ;;  %v3887_v8 = vadd.f32 %v1451_v33, %v1363_v13  ;;  %v3064_v33 = vld [vmem:[%s4780_s1 + $0x88] sm:$0xff]  ;;  %v640_v13 = vrot.slane %v3580_v48, 1 }
 0x115   : > { %1927 = vmatpush.bf16.msra.mxu3 %v3104_v21  ;;  %1530 = vmatpush.bf16.msra.mxu1 %v3064_v33 }
 0x116   : > { %4839 = vst [vmem:[#allocation33_spill] sm:$0xff] %v3887_v8 }
 0x117   : > { %v1132_v23 = vpop.f32.mrf.mxu2  ;;  %v1365_v5 = vpop.f32.mrf.mxu3 }
 0x118   : > { %v1133_v61 = vadd.f32 %v1132_v23, %v1044_v29  ;;  %v1045_v45 = vpop.f32.mrf.mxu1  ;;  %v1456_v24 = vpop.f32.mrf.mxu0 }
 0x119   : > { %v1046_v52 = vadd.f32 %v1045_v45, %v3772_v31  ;;  %v641_v31 = vrot.slane %v390_v35, 1  ;;  %v375_v45 = vunpack.c.l.b16 %v237_v50  ;;  %v554_v35 = vshll.u32 %v3416_v37, 16 }
 0x11a   : > { %v1366_v2 = vadd.f32 %v1365_v5, %v1133_v61  ;;  %v3902_v61 = vsel %vm394_vm0, %v545_v12, %v549_v10  ;;  %v552_v12 = vshrl.u32 %v3416_v37, 16 }
 0x11b   : > { %v3906_v26 = vsel %vm603_vm1, %v640_v13, %v641_v31  ;;  %v556_v10 = vrot.slane %v554_v35, 1  ;;  %v186_v31 = vld [vmem:[%s3385_s7 + $0x160] sm:$0x3] }
 0x11c   : > { %v3898_v29 = vadd.f32 %v1454_v47, %v1366_v2  ;;  %4841 = vst [vmem:[#allocation35_spill] sm:$0xff] %v3906_v26  ;;  %v391_v47 = vpack.c.b16 %v375_v45, %v375_v45 }
 0x11e   : > { %4840 = vst [vmem:[#allocation34_spill] sm:$0xff] %v3898_v29  ;;  %v559_v50 = vshll.u32 %v391_v47, 16 }
 0x11f   : > { %v1134_v15 = vpop.f32.mrf.mxu2  ;;  %v1367_v3 = vpop.f32.mrf.mxu3 }
 0x120   : > { %v1135_v21 = vadd.f32 %v1134_v15, %v1046_v52  ;;  %v1048_v23 = vpop.f32.mrf.mxu1  ;;  %v1459_v5 = vpop.f32.mrf.mxu0 }
 0x121   : > { %v1049_v39 = vadd.f32 %v1048_v23, %v3789_v28  ;;  %v240_v23 = vpack.c.bf16 %v186_v31, %v186_v31 }
 0x122   : > { %v1368_v57 = vadd.f32 %v1367_v3, %v1135_v21  ;;  %v557_v3 = vor.u32 %v556_v10, %v552_v12  ;;  %v561_v21 = vrot.slane %v559_v50, 1 }
 0x123   : > { %1087 = vmatmul.bf16.gmra.mxu1 %v3902_v61  ;;  %1498 = vmatmul.bf16.gmra.mxu0 %v3870_v42  ;;  %v376_v8 = vunpack.c.l.b16 %v240_v23  ;;  %v189_v23 = vld [vmem:[%s3385_s7 + $0x178] sm:$0x3] }
 0x124   : > { %1176 = vmatmul.bf16.gmra.mxu2 %v3906_v26  ;;  %1409 = vmatmul.bf16.gmra.mxu3 %v3544_v62  ;;  %v3913_v52 = vadd.f32 %v1456_v24, %v1368_v57  ;;  %v643_v24 = vrot.slane %v3416_v37, 1  ;;  %v644_v57 = vrot.slane %v391_v47, 1  ;;  %v3922_v35 = vsel %vm394_vm0, %v557_v3, %v561_v21 }
 0x125   : > { %v566_v47 = vshll.u32 %v3484_v17, 16 }
 0x126   : > { %4842 = vst [vmem:[#allocation36_spill] sm:$0xff] %v3913_v52 }
 0x127   : > { %v1137_v9 = vpop.f32.mrf.mxu2  ;;  %v1370_v28 = vpop.f32.mrf.mxu3  ;;  %v568_v3 = vrot.slane %v566_v47, 1 }
 0x128   : > { %v1138_v2 = vadd.f32 %v1137_v9, %v1049_v39  ;;  %v1050_v33 = vpop.f32.mrf.mxu1  ;;  %v1461_v6 = vpop.f32.mrf.mxu0 }
 0x129   : > { %v1051_v13 = vadd.f32 %v1050_v33, %v3808_v53  ;;  %v3925_v53 = vsel %vm603_vm1, %v643_v24, %v644_v57 }
 0x12a   : > { %v1371_v15 = vadd.f32 %v1370_v28, %v1138_v2  ;;  %v3103_v2 = vld [vmem:[%s4780_s1 + $0x1c0] sm:$0xff] }
 0x12b   : > { %1928 = vmatpush.bf16.msra.mxu3 %v3103_v2 }
 0x12c   : > { %v3918_v45 = vadd.f32 %v1459_v5, %v1371_v15  ;;  %v392_v5 = vpack.c.b16 %v376_v8, %v376_v8  ;;  %v564_v15 = vshrl.u32 %v3484_v17, 16 }
 0x12e   : > { %v571_v21 = vshll.u32 %v392_v5, 16  ;;  %v647_v47 = vrot.slane %v392_v5, 1 }
 0x12f   : > { %v1139_v52 = vpop.f32.mrf.mxu2  ;;  %v1372_v39 = vpop.f32.mrf.mxu3 }
 0x130   : > { %v1140_v9 = vadd.f32 %v1139_v52, %v1051_v13  ;;  %v1053_v26 = vpop.f32.mrf.mxu1  ;;  %v1464_v29 = vpop.f32.mrf.mxu0  ;;  %v3095_v52 = vld [vmem:[%s4780_s1 + $0x180] sm:$0xff]  ;;  %v573_v57 = vrot.slane %v571_v21, 1 }
 0x131   : > { %v1054_v12 = vadd.f32 %v1053_v26, %v3677_v41  ;;  %1839 = vmatpush.bf16.msra.mxu2 %v3095_v52  ;;  %v3111_v41 = vld [vmem:[%s4780_s1 + $0x200] sm:$0xff]  ;;  %v569_v26 = vor.u32 %v568_v3, %v564_v15 }
 0x132   : > { %v1373_v28 = vadd.f32 %v1372_v39, %v1140_v9  ;;  %v243_v39 = vpack.c.bf16 %v189_v23, %v189_v23  ;;  %2017 = vmatpush.bf16.msra.mxu0 %v3111_v41 }
 0x133   : > { %1092 = vmatmul.bf16.gmra.mxu1 %v3922_v35  ;;  %1503 = vmatmul.bf16.gmra.mxu0 %v3902_v61 }
 0x134   : > { %1181 = vmatmul.bf16.gmra.mxu2 %v3925_v53  ;;  %1414 = vmatmul.bf16.gmra.mxu3 %v3580_v48  ;;  %v3938_v33 = vadd.f32 %v1461_v6, %v1373_v28  ;;  %v3063_v6 = vld [vmem:[%s4780_s1 + $0x80] sm:$0xff]  ;;  %v646_v28 = vrot.slane %v3484_v17, 1  ;;  %v377_v15 = vunpack.c.l.b16 %v243_v39 }
 0x135   : > { %1531 = vmatpush.bf16.msra.mxu1 %v3063_v6 }
 0x136   : > { %4843 = vst [vmem:[#allocation37_spill] sm:$0xff] %v3938_v33  ;;  %v3954_v33 = vsel %vm394_vm0, %v569_v26, %v573_v57  ;;  %v3957_v3 = vsel %vm603_vm1, %v646_v28, %v647_v47  ;;  %v576_v57 = vshrl.u32 %v3546_v63, 16  ;;  %v192_v47 = vld [vmem:[%s3385_s7 + $0x190] sm:$0x3] }
 0x137   : > { %v1142_v10 = vpop.f32.mrf.mxu2  ;;  %v1375_v50 = vpop.f32.mrf.mxu3  ;;  %4845 = vst [vmem:[#allocation39_spill] sm:$0xff] %v3957_v3 }
 0x138   : > { %v1143_v8 = vadd.f32 %v1142_v10, %v1054_v12  ;;  %v1055_v13 = vpop.f32.mrf.mxu1  ;;  %v1466_v31 = vpop.f32.mrf.mxu0 }
 0x139   : > { %v1056_v52 = vadd.f32 %v1055_v13, %v3702_v59  ;;  %v393_v59 = vpack.c.b16 %v377_v15, %v377_v15 }
 0x13a   : > { %v1376_v24 = vadd.f32 %v1375_v50, %v1143_v8 }
 0x13b   : > { %v583_v28 = vshll.u32 %v393_v59, 16 }
 0x13c   : > { %v3949_v9 = vadd.f32 %v1464_v29, %v1376_v24  ;;  %v578_v29 = vshll.u32 %v3546_v63, 16 }
 0x13e   : > { %4844 = vst [vmem:[#allocation38_spill] sm:$0xff] %v3949_v9  ;;  %v580_v39 = vrot.slane %v578_v29, 1 }
 0x13f   : > { %v1144_v2 = vpop.f32.mrf.mxu2  ;;  %v1377_v12 = vpop.f32.mrf.mxu3 }
 0x140   : > { %v1145_v10 = vadd.f32 %v1144_v2, %v1056_v52  ;;  %v1058_v50 = vpop.f32.mrf.mxu1  ;;  %v1469_v8 = vpop.f32.mrf.mxu0  ;;  %v581_v2 = vor.u32 %v580_v39, %v576_v57 }
 0x141   : > { %v1059_v13 = vadd.f32 %v1058_v50, %v3719_v19 }
 0x142   : > { %v1378_v21 = vadd.f32 %v1377_v12, %v1145_v10  ;;  %v585_v12 = vrot.slane %v583_v28, 1  ;;  %v246_v10 = vpack.c.bf16 %v192_v47, %v192_v47 }
 0x143   : > { %1097 = vmatmul.bf16.gmra.mxu1 %v3954_v33  ;;  %1508 = vmatmul.bf16.gmra.mxu0 %v3922_v35 }
 0x144   : > { %1186 = vmatmul.bf16.gmra.mxu2 %v3957_v3  ;;  %1419 = vmatmul.bf16.gmra.mxu3 %v3416_v37  ;;  %v3964_v5 = vadd.f32 %v1466_v31, %v1378_v21  ;;  %v649_v31 = vrot.slane %v3546_v63, 1  ;;  %v650_v21 = vrot.slane %v393_v59, 1  ;;  %v3974_v29 = vsel %vm394_vm0, %v581_v2, %v585_v12 }
 0x145   : > { %v723_v9 = vunpack.c.l.b16 %v246_v10  ;;  %v726_v2 = vshrl.u32 %v3582_v49, 16 }
 0x146   : > { %4846 = vst [vmem:[#allocation40_spill] sm:$0xff] %v3964_v5 }
 0x147   : > { %v1147_v23 = vpop.f32.mrf.mxu2  ;;  %v1380_v24 = vpop.f32.mrf.mxu3 }
 0x148   : > { %v1148_v6 = vadd.f32 %v1147_v23, %v1059_v13  ;;  %v1060_v41 = vpop.f32.mrf.mxu1  ;;  %v1471_v26 = vpop.f32.mrf.mxu0 }
 0x149   : > { %v1061_v19 = vadd.f32 %v1060_v41, %v3738_v30  ;;  %v724_v30 = vpack.c.b16 %v723_v9, %v723_v9  ;;  %v738_v9 = vrot.slane %v3582_v49, 1 }
 0x14a   : > { %v1381_v52 = vadd.f32 %v1380_v24, %v1148_v6  ;;  %v3977_v24 = vsel %vm603_vm1, %v649_v31, %v650_v21 }
 0x14b   : > { %v733_v10 = vshll.u32 %v724_v30, 16 }
 0x14c   : > { %v3969_v15 = vadd.f32 %v1469_v8, %v1381_v52  ;;  %v728_v8 = vshll.u32 %v3582_v49, 16 }
 0x14e   : > { %v730_v12 = vrot.slane %v728_v8, 1 }
 0x14f   : > { %v1149_v50 = vpop.f32.mrf.mxu2  ;;  %v1382_v13 = vpop.f32.mrf.mxu3 }
 0x150   : > { %v1150_v23 = vadd.f32 %v1149_v50, %v1061_v19  ;;  %v1063_v5 = vpop.f32.mrf.mxu1  ;;  %v1474_v3 = vpop.f32.mrf.mxu0  ;;  %v731_v21 = vor.u32 %v730_v12, %v726_v2  ;;  %v735_v19 = vrot.slane %v733_v10, 1 }
 0x151   : > { %v1064_v41 = vadd.f32 %v1063_v5, %v3749_v4 }
 0x152   : > { %v1383_v6 = vadd.f32 %v1382_v13, %v1150_v23 }
 0x153   : > { %1102 = vmatmul.bf16.gmra.mxu1 %v3974_v29  ;;  %1513 = vmatmul.bf16.gmra.mxu0 %v3954_v33 }
 0x154   : > { %1191 = vmatmul.bf16.gmra.mxu2 %v3977_v24  ;;  %1424 = vmatmul.bf16.gmra.mxu3 %v3484_v17  ;;  %v3984_v59 = vadd.f32 %v1471_v26, %v1383_v6  ;;  %v739_v26 = vrot.slane %v724_v30, 1 }
 0x156   : > { %v3996_v8 = vsel %vm603_vm1, %v738_v9, %v739_v26 }
 0x157   : > { %v1152_v57 = vpop.f32.mrf.mxu2  ;;  %v1385_v39 = vpop.f32.mrf.mxu3 }
 0x158   : > { %v1153_v28 = vadd.f32 %v1152_v57, %v1064_v41  ;;  %v1065_v47 = vpop.f32.mrf.mxu1  ;;  %v1476_v52 = vpop.f32.mrf.mxu0  ;;  %v3993_v57 = vsel %vm394_vm0, %v731_v21, %v735_v19  ;;  %v605_v21 = vrot.slane %v3591_v55, 1 }
 0x159   : > { %v1066_v13 = vadd.f32 %v1065_v47, %v3774_v32 }
 0x15a   : > { %v1386_v31 = vadd.f32 %v1385_v39, %v1153_v28 }
 0x15c   : > { %v3988_v50 = vadd.f32 %v1474_v3, %v1386_v31  ;;  %v604_v31 = vrot.slane %v3584_v51, 1 }
 0x15f   : > { %v1154_v4 = vpop.f32.mrf.mxu2  ;;  %v1387_v5 = vpop.f32.mrf.mxu3 }
 0x160   : > { %v1155_v23 = vadd.f32 %v1154_v4, %v1066_v13  ;;  %v1068_v6 = vpop.f32.mrf.mxu1  ;;  %v1479_v41 = vpop.f32.mrf.mxu0 }
 0x161   : > { %v1069_v3 = vadd.f32 %v1068_v6, %v3791_v7  ;;  %v606_v7 = vsel %vm603_vm1, %v604_v31, %v605_v21 }
 0x162   : > { %v1388_v39 = vadd.f32 %v1387_v5, %v1155_v23 }
 0x163   : > { %1107 = vmatmul.bf16.gmra.mxu1 %v3993_v57  ;;  %1518 = vmatmul.bf16.gmra.mxu0 %v3974_v29 }
 0x164   : > { %1196 = vmatmul.bf16.gmra.mxu2 %v3996_v8  ;;  %1429 = vmatmul.bf16.gmra.mxu3 %v3546_v63  ;;  %v4002_v32 = vadd.f32 %v1476_v52, %v1388_v39 }
 0x167   : > { %v1157_v30 = vpop.f32.mrf.mxu2  ;;  %v1390_v28 = vpop.f32.mrf.mxu3 }
 0x168   : > { %v1158_v47 = vadd.f32 %v1157_v30, %v1069_v3  ;;  %v1070_v2 = vpop.f32.mrf.mxu1  ;;  %v1481_v12 = vpop.f32.mrf.mxu0 }
 0x169   : > { %v1071_v9 = vadd.f32 %v1070_v2, %v3810_v0 }
 0x16a   : > { %v1391_v10 = vadd.f32 %v1390_v28, %v1158_v47 }
 0x16c   : > { %v4007_v19 = vadd.f32 %v1479_v41, %v1391_v10 }
 0x16f   : > { %v1159_v26 = vpop.f32.mrf.mxu2  ;;  %v1392_v13 = vpop.f32.mrf.mxu3 }
 0x170   : > { %v1160_v52 = vadd.f32 %v1159_v26, %v1071_v9  ;;  %v1073_v4 = vpop.f32.mrf.mxu1  ;;  %v1484_v5 = vpop.f32.mrf.mxu0 }
 0x171   : > { %v1074_v55 = vadd.f32 %v1073_v4, %v3696_v54 }
 0x172   : > { %v1393_v23 = vadd.f32 %v1392_v13, %v1160_v52 }
 0x173   : > { %1532 = vmatmul.bf16.vlgmr.msra.gmra.mxu1 %v606_v7  ;;  %2018 = vmatmul.bf16.vlgmr.msra.gmra.mxu0 %v3626_v40 }
 0x174   : > { %1840 = vmatmul.bf16.vlgmr.msra.gmra.mxu2 %v3478_v14  ;;  %1929 = vmatmul.bf16.vlgmr.msra.gmra.mxu3 %v3623_v38  ;;  %v4014_v51 = vadd.f32 %v1481_v12, %v1393_v23 }
 0x177   : > { %v1162_v0 = vpop.f32.mrf.mxu2  ;;  %v1395_v6 = vpop.f32.mrf.mxu3 }
 0x178   : > { %v1163_v41 = vadd.f32 %v1162_v0, %v1074_v55  ;;  %v1075_v39 = vpop.f32.mrf.mxu1  ;;  %v1486_v3 = vpop.f32.mrf.mxu0 }
 0x179   : > { %v1076_v47 = vadd.f32 %v1075_v39, %v3713_v11 }
 0x17a   : > { %v1396_v30 = vadd.f32 %v1395_v6, %v1163_v41 }
 0x17c   : > { %v4017_v28 = vadd.f32 %v1484_v5, %v1396_v30 }
 0x17f   : > { %v1164_v2 = vpop.f32.mrf.mxu2  ;;  %v1397_v10 = vpop.f32.mrf.mxu3 }
 0x180   : > { %v1165_v31 = vadd.f32 %v1164_v2, %v1076_v47  ;;  %v1078_v14 = vpop.f32.mrf.mxu1  ;;  %v1489_v21 = vpop.f32.mrf.mxu0 }
 0x181   : > { %v1079_v12 = vadd.f32 %v1078_v14, %v3732_v27 }
 0x182   : > { %v1398_v38 = vadd.f32 %v1397_v10, %v1165_v31  ;;  %v4847_v10 = vld [vmem:[#allocation20_spill] sm:$0xff] }
 0x183   : > { %1537 = vmatmul.bf16.gmra.mxu1 %v3602_v18  ;;  %2023 = vmatmul.bf16.gmra.mxu0 %v3639_v34 }
 0x184   : > { %1845 = vmatmul.bf16.gmra.mxu2 %v3540_v60  ;;  %1934 = vmatmul.bf16.gmra.mxu3 %v3636_v58  ;;  %v4024_v54 = vadd.f32 %v1486_v3, %v1398_v38 }
 0x187   : > { %v1167_v9 = vpop.f32.mrf.mxu2  ;;  %v1400_v11 = vpop.f32.mrf.mxu3 }
 0x188   : > { %v1168_v26 = vadd.f32 %v1167_v9, %v1079_v12  ;;  %v1080_v13 = vpop.f32.mrf.mxu1  ;;  %v1491_v52 = vpop.f32.mrf.mxu0  ;;  %v4848_v12 = vld [vmem:[#allocation10_spill] sm:$0xff]  ;;  %v4850_v9 = vld [vmem:[#allocation9_spill] sm:$0xff] }
 0x189   : > { %v1081_v18 = vadd.f32 %v1080_v13, %v3743_v1 }
 0x18a   : > { %v1401_v4 = vadd.f32 %v1400_v11, %v1168_v26  ;;  %v4851_v26 = vld [vmem:[#allocation24_spill] sm:$0xff] }
 0x18c   : > { %v4027_v5 = vadd.f32 %v1489_v21, %v1401_v4 }
 0x18f   : > { %v1169_v7 = vpop.f32.mrf.mxu2  ;;  %v1402_v23 = vpop.f32.mrf.mxu3 }
 0x190   : > { %v1170_v55 = vadd.f32 %v1169_v7, %v1081_v18  ;;  %v1083_v60 = vpop.f32.mrf.mxu1  ;;  %v1494_v0 = vpop.f32.mrf.mxu0 }
 0x191   : > { %v1084_v6 = vadd.f32 %v1083_v60, %v3768_v25  ;;  %v4849_v25 = vld [vmem:[#allocation5_spill] sm:$0xff] }
 0x192   : > { %v1403_v58 = vadd.f32 %v1402_v23, %v1170_v55 }
 0x193   : > { %1542 = vmatmul.bf16.gmra.mxu1 %v3626_v40  ;;  %2028 = vmatmul.bf16.gmra.mxu0 %v3665_v22 }
 0x194   : > { %1850 = vmatmul.bf16.gmra.mxu2 %v3576_v46  ;;  %1939 = vmatmul.bf16.gmra.mxu3 %v3662_v20  ;;  %v4034_v27 = vadd.f32 %v1491_v52, %v1403_v58 }
 0x197   : > { %v1172_v41 = vpop.f32.mrf.mxu2  ;;  %v1405_v1 = vpop.f32.mrf.mxu3 }
 0x198   : > { %v1173_v39 = vadd.f32 %v1172_v41, %v1084_v6  ;;  %v1085_v3 = vpop.f32.mrf.mxu1  ;;  %v1496_v30 = vpop.f32.mrf.mxu0 }
 0x199   : > { %v1086_v40 = vadd.f32 %v1085_v3, %v4847_v10  ;;  %v4855_v10 = vld [vmem:[#allocation13_spill] sm:$0xff] }
 0x19a   : > { %v1406_v47 = vadd.f32 %v1405_v1, %v1173_v39 }
 0x19c   : > { %v4037_v2 = vadd.f32 %v1494_v0, %v1406_v47  ;;  %v4852_v0 = vld [vmem:[#allocation26_spill] sm:$0xff] }
 0x19d   : > { %v4854_v47 = vld [vmem:[#allocation6_spill] sm:$0xff] }
 0x19f   : > { %v1174_v31 = vpop.f32.mrf.mxu2  ;;  %v1407_v14 = vpop.f32.mrf.mxu3 }
 0x1a0   : > { %v1175_v21 = vadd.f32 %v1174_v31, %v1086_v40  ;;  %v1088_v46 = vpop.f32.mrf.mxu1  ;;  %v1499_v38 = vpop.f32.mrf.mxu0  ;;  %v4856_v31 = vld [vmem:[#allocation11_spill] sm:$0xff] }
 0x1a1   : > { %v1089_v13 = vadd.f32 %v1088_v46, %v4851_v26 }
 0x1a2   : > { %v1408_v20 = vadd.f32 %v1407_v14, %v1175_v21 }
 0x1a3   : > { %1547 = vmatmul.bf16.gmra.mxu1 %v3639_v34  ;;  %2033 = vmatmul.bf16.gmra.mxu0 %v4848_v12 }
 0x1a4   : > { %1855 = vmatmul.bf16.gmra.mxu2 %v4849_v25  ;;  %1944 = vmatmul.bf16.gmra.mxu3 %v4850_v9  ;;  %v4044_v11 = vadd.f32 %v1496_v30, %v1408_v20  ;;  %v4853_v30 = vld [vmem:[#allocation14_spill] sm:$0xff] }
 0x1a7   : > { %v1177_v52 = vpop.f32.mrf.mxu2  ;;  %v1410_v4 = vpop.f32.mrf.mxu3 }
 0x1a8   : > { %v1178_v18 = vadd.f32 %v1177_v52, %v1089_v13  ;;  %v1090_v7 = vpop.f32.mrf.mxu1  ;;  %v1501_v23 = vpop.f32.mrf.mxu0  ;;  %v4857_v13 = vld [vmem:[#allocation12_spill] sm:$0xff] }
 0x1a9   : > { %v1091_v34 = vadd.f32 %v1090_v7, %v4852_v0 }
 0x1aa   : > { %v1411_v55 = vadd.f32 %v1410_v4, %v1178_v18 }
 0x1ac   : > { %v4047_v60 = vadd.f32 %v1499_v38, %v1411_v55 }
 0x1af   : > { %v1179_v58 = vpop.f32.mrf.mxu2  ;;  %v1412_v6 = vpop.f32.mrf.mxu3 }
 0x1b0   : > { %v1180_v41 = vadd.f32 %v1179_v58, %v1091_v34  ;;  %v1093_v1 = vpop.f32.mrf.mxu1  ;;  %v1504_v39 = vpop.f32.mrf.mxu0  ;;  %v4859_v34 = vld [vmem:[#allocation7_spill] sm:$0xff]  ;;  %v4860_v58 = vld [vmem:[#allocation17_spill] sm:$0xff] }
 0x1b1   : > { %v1094_v14 = vadd.f32 %v1093_v1, %v4856_v31 }
 0x1b2   : > { %v1413_v3 = vadd.f32 %v1412_v6, %v1180_v41  ;;  %v4861_v41 = vld [vmem:[#allocation15_spill] sm:$0xff] }
 0x1b3   : > { %1552 = vmatmul.bf16.gmra.mxu1 %v3665_v22  ;;  %2038 = vmatmul.bf16.gmra.mxu0 %v4853_v30 }
 0x1b4   : > { %1860 = vmatmul.bf16.gmra.mxu2 %v4854_v47  ;;  %1949 = vmatmul.bf16.gmra.mxu3 %v4855_v10  ;;  %v4054_v40 = vadd.f32 %v1501_v23, %v1413_v3  ;;  %v4858_v23 = vld [vmem:[#allocation18_spill] sm:$0xff] }
 0x1b7   : > { %v1182_v21 = vpop.f32.mrf.mxu2  ;;  %v1415_v46 = vpop.f32.mrf.mxu3 }
 0x1b8   : > { %v1183_v38 = vadd.f32 %v1182_v21, %v1094_v14  ;;  %v1095_v20 = vpop.f32.mrf.mxu1  ;;  %v1506_v25 = vpop.f32.mrf.mxu0 }
 0x1b9   : > { %v1096_v22 = vadd.f32 %v1095_v20, %v4857_v13 }
 0x1ba   : > { %v1416_v9 = vadd.f32 %v1415_v46, %v1183_v38  ;;  %v4862_v46 = vld [vmem:[#allocation16_spill] sm:$0xff] }
 0x1bc   : > { %v4057_v26 = vadd.f32 %v1504_v39, %v1416_v9 }
 0x1bf   : > { %v1184_v52 = vpop.f32.mrf.mxu2  ;;  %v1417_v4 = vpop.f32.mrf.mxu3 }
 0x1c0   : > { %v1185_v18 = vadd.f32 %v1184_v52, %v1096_v22  ;;  %v1098_v7 = vpop.f32.mrf.mxu1  ;;  %v1509_v55 = vpop.f32.mrf.mxu0 }
 0x1c1   : > { %v1099_v1 = vadd.f32 %v1098_v7, %v4861_v41 }
 0x1c2   : > { %v1418_v0 = vadd.f32 %v1417_v4, %v1185_v18  ;;  %v4864_v4 = vld [vmem:[#allocation8_spill] sm:$0xff]  ;;  %v4865_v18 = vld [vmem:[#allocation22_spill] sm:$0xff] }
 0x1c3   : > { %1557 = vmatmul.bf16.gmra.mxu1 %v4848_v12  ;;  %2043 = vmatmul.bf16.gmra.mxu0 %v4858_v23 }
 0x1c4   : > { %1865 = vmatmul.bf16.gmra.mxu2 %v4859_v34  ;;  %1954 = vmatmul.bf16.gmra.mxu3 %v4860_v58  ;;  %v4064_v6 = vadd.f32 %v1506_v25, %v1418_v0  ;;  %v4863_v25 = vld [vmem:[#allocation23_spill] sm:$0xff] }
 0x1c7   : > { %v1187_v39 = vpop.f32.mrf.mxu2  ;;  %v1420_v3 = vpop.f32.mrf.mxu3 }
 0x1c8   : > { %v1188_v47 = vadd.f32 %v1187_v39, %v1099_v1  ;;  %v1100_v10 = vpop.f32.mrf.mxu1  ;;  %v1511_v31 = vpop.f32.mrf.mxu0 }
 0x1c9   : > { %v1101_v12 = vadd.f32 %v1100_v10, %v4862_v46  ;;  %v4867_v10 = vld [vmem:[#allocation21_spill] sm:$0xff] }
 0x1ca   : > { %v1421_v14 = vadd.f32 %v1420_v3, %v1188_v47 }
 0x1cc   : > { %v4067_v21 = vadd.f32 %v1509_v55, %v1421_v14  ;;  %v4866_v55 = vld [vmem:[#allocation19_spill] sm:$0xff] }
 0x1cf   : > { %v1189_v38 = vpop.f32.mrf.mxu2  ;;  %v1422_v20 = vpop.f32.mrf.mxu3 }
 0x1d0   : > { %v1190_v9 = vadd.f32 %v1189_v38, %v1101_v12  ;;  %v1103_v13 = vpop.f32.mrf.mxu1  ;;  %v1514_v22 = vpop.f32.mrf.mxu0 }
 0x1d1   : > { %v1104_v0 = vadd.f32 %v1103_v13, %v4866_v55  ;;  %v4869_v13 = vld [vmem:[#allocation28_spill] sm:$0xff] }
 0x1d2   : > { %v1423_v52 = vadd.f32 %v1422_v20, %v1190_v9 }
 0x1d3   : > { %1562 = vmatmul.bf16.gmra.mxu1 %v4853_v30  ;;  %2048 = vmatmul.bf16.gmra.mxu0 %v4863_v25 }
 0x1d4   : > { %1870 = vmatmul.bf16.gmra.mxu2 %v4864_v4  ;;  %1959 = vmatmul.bf16.gmra.mxu3 %v4865_v18  ;;  %v4074_v7 = vadd.f32 %v1511_v31, %v1423_v52  ;;  %v4868_v31 = vld [vmem:[#allocation29_spill] sm:$0xff] }
 0x1d7   : > { %v1192_v34 = vpop.f32.mrf.mxu2  ;;  %v1425_v58 = vpop.f32.mrf.mxu3 }
 0x1d8   : > { %v1193_v41 = vadd.f32 %v1192_v34, %v1104_v0  ;;  %v1105_v1 = vpop.f32.mrf.mxu1  ;;  %v1516_v39 = vpop.f32.mrf.mxu0 }
 0x1d9   : > { %v1106_v30 = vadd.f32 %v1105_v1, %v4867_v10 }
 0x1da   : > { %v1426_v3 = vadd.f32 %v1425_v58, %v1193_v41 }
 0x1dc   : > { %v4077_v47 = vadd.f32 %v1514_v22, %v1426_v3  ;;  %v4870_v22 = vld [vmem:[#allocation25_spill] sm:$0xff]  ;;  %v4871_v3 = vld [vmem:[#allocation27_spill] sm:$0xff] }
 0x1df   : > { %v1194_v14 = vpop.f32.mrf.mxu2  ;;  %v1427_v46 = vpop.f32.mrf.mxu3 }
 0x1e0   : > { %v1195_v12 = vadd.f32 %v1194_v14, %v1106_v30  ;;  %v1108_v38 = vpop.f32.mrf.mxu1  ;;  %v1519_v20 = vpop.f32.mrf.mxu0 }
 0x1e1   : > { %v1109_v4 = vadd.f32 %v1108_v38, %v4870_v22  ;;  %v4873_v38 = vld [vmem:[#allocation31_spill] sm:$0xff] }
 0x1e2   : > { %v1428_v9 = vadd.f32 %v1427_v46, %v1195_v12  ;;  %v4872_v12 = vld [vmem:[#allocation30_spill] sm:$0xff] }
 0x1e3   : > { %1567 = vmatmul.bf16.gmra.mxu1 %v4858_v23  ;;  %2053 = vmatmul.bf16.gmra.mxu0 %v4868_v31 }
 0x1e4   : > { %1875 = vmatmul.bf16.gmra.mxu2 %v3414_v36  ;;  %1964 = vmatmul.bf16.gmra.mxu3 %v4869_v13  ;;  %v4084_v52 = vadd.f32 %v1516_v39, %v1428_v9 }
 0x1e7   : > { %v1197_v18 = vpop.f32.mrf.mxu2  ;;  %v1430_v55 = vpop.f32.mrf.mxu3 }
 0x1e8   : > { %v1198_v0 = vadd.f32 %v1197_v18, %v1109_v4  ;;  %v1110_v34 = vpop.f32.mrf.mxu1  ;;  %v1521_v58 = vpop.f32.mrf.mxu0 }
 0x1e9   : > { %v1111_v23 = vadd.f32 %v1110_v34, %v4871_v3 }
 0x1ea   : > { %v1431_v41 = vadd.f32 %v1430_v55, %v1198_v0  ;;  %v4874_v0 = vld [vmem:[#allocation32_spill] sm:$0xff] }
 0x1ec   : > { %v4087_v1 = vadd.f32 %v1519_v20, %v1431_v41 }
 0x1ef   : > { %v1199_v10 = vpop.f32.mrf.mxu2  ;;  %v1432_v30 = vpop.f32.mrf.mxu3 }
 0x1f0   : > { %v1200_v14 = vadd.f32 %v1199_v10, %v1111_v23  ;;  %v1533_v36 = vpop.f32.mrf.mxu1  ;;  %v2019_v46 = vpop.f32.mrf.mxu0 }
 0x1f1   : > { %v1534_v39 = vadd.f32 %v1533_v36, %v4872_v12 }
 0x1f2   : > { %v1433_v9 = vadd.f32 %v1432_v30, %v1200_v14 }
 0x1f3   : > { %1572 = vmatmul.bf16.gmra.mxu1 %v4863_v25  ;;  %2058 = vmatmul.bf16.gmra.mxu0 %v4873_v38 }
 0x1f4   : > { %1880 = vmatmul.bf16.gmra.mxu2 %v3482_v16  ;;  %1969 = vmatmul.bf16.gmra.mxu3 %v3850_v44  ;;  %v4095_v20 = vadd.f32 %v1521_v58, %v1433_v9 }
 0x1f7   : > { %v1841_v13 = vpop.f32.mrf.mxu2  ;;  %v1930_v22 = vpop.f32.mrf.mxu3 }
 0x1f8   : > { %v1931_v4 = vadd.f32 %v1930_v22, %v1841_v13  ;;  %v1535_v18 = vpop.f32.mrf.mxu1  ;;  %v2021_v55 = vpop.f32.mrf.mxu0  ;;  %v4875_v13 = vld [vmem:[#allocation33_spill] sm:$0xff] }
 0x1f9   : > { %v1536_v34 = vadd.f32 %v1535_v18, %v4874_v0 }
 0x1fa   : > { %v2020_v41 = vadd.f32 %v2019_v46, %v1931_v4 }
 0x1fc   : > { %v4098_v3 = vadd.f32 %v2020_v41, %v1534_v39  ;;  %v4876_v41 = vld [vmem:[#allocation34_spill] sm:$0xff] }
 0x1ff   : > { %v1843_v23 = vpop.f32.mrf.mxu2  ;;  %v1932_v25 = vpop.f32.mrf.mxu3 }
 0x200   : > { %v1933_v10 = vadd.f32 %v1932_v25, %v1843_v23  ;;  %v1538_v30 = vpop.f32.mrf.mxu1  ;;  %v2024_v14 = vpop.f32.mrf.mxu0 }
 0x201   : > { %v1539_v16 = vadd.f32 %v1538_v30, %v3866_v43 }
 0x202   : > { %v2022_v44 = vadd.f32 %v2021_v55, %v1933_v10 }
 0x203   : > { %1577 = vmatmul.bf16.gmra.mxu1 %v4868_v31  ;;  %2063 = vmatmul.bf16.gmra.mxu0 %v3874_v56 }
 0x204   : > { %v4103_v58 = vadd.f32 %v2022_v44, %v1536_v34  ;;  %1885 = vmatmul.bf16.gmra.mxu2 %v3544_v62  ;;  %1974 = vmatmul.bf16.gmra.mxu3 %v3870_v42  ;;  %v4877_v42 = vld [vmem:[#allocation35_spill] sm:$0xff] }
 0x207   : > { %v1846_v36 = vpop.f32.mrf.mxu2  ;;  %v1935_v46 = vpop.f32.mrf.mxu3 }
 0x208   : > { %v1936_v12 = vadd.f32 %v1935_v46, %v1846_v36  ;;  %v1540_v39 = vpop.f32.mrf.mxu1  ;;  %v2026_v9 = vpop.f32.mrf.mxu0  ;;  %v4878_v36 = vld [vmem:[#allocation36_spill] sm:$0xff] }
 0x209   : > { %v1541_v22 = vadd.f32 %v1540_v39, %v4875_v13 }
 0x20a   : > { %v2025_v4 = vadd.f32 %v2024_v14, %v1936_v12 }
 0x20c   : > { %v4108_v43 = vadd.f32 %v2025_v4, %v1539_v16 }
 0x20f   : > { %v1848_v18 = vpop.f32.mrf.mxu2  ;;  %v1937_v31 = vpop.f32.mrf.mxu3 }
 0x210   : > { %v1938_v55 = vadd.f32 %v1937_v31, %v1848_v18  ;;  %v1543_v0 = vpop.f32.mrf.mxu1  ;;  %v2029_v34 = vpop.f32.mrf.mxu0 }
 0x211   : > { %v1544_v23 = vadd.f32 %v1543_v0, %v4876_v41 }
 0x212   : > { %v2027_v62 = vadd.f32 %v2026_v9, %v1938_v55 }
 0x213   : > { %1582 = vmatmul.bf16.gmra.mxu1 %v4873_v38  ;;  %2068 = vmatmul.bf16.gmra.mxu0 %v4877_v42 }
 0x214   : > { %v4113_v25 = vadd.f32 %v2027_v62, %v1541_v22  ;;  %1890 = vmatmul.bf16.gmra.mxu2 %v3580_v48  ;;  %1979 = vmatmul.bf16.gmra.mxu3 %v3902_v61 }
 0x217   : > { %v1851_v10 = vpop.f32.mrf.mxu2  ;;  %v1940_v30 = vpop.f32.mrf.mxu3 }
 0x218   : > { %v1941_v14 = vadd.f32 %v1940_v30, %v1851_v10  ;;  %v1545_v16 = vpop.f32.mrf.mxu1  ;;  %v2031_v44 = vpop.f32.mrf.mxu0 }
 0x219   : > { %v1546_v46 = vadd.f32 %v1545_v16, %v4878_v36  ;;  %v4880_v36 = vld [vmem:[#allocation38_spill] sm:$0xff] }
 0x21a   : > { %v2030_v12 = vadd.f32 %v2029_v34, %v1941_v14 }
 0x21c   : > { %v4118_v39 = vadd.f32 %v2030_v12, %v1544_v23  ;;  %v4879_v23 = vld [vmem:[#allocation37_spill] sm:$0xff] }
 0x21f   : > { %v1853_v9 = vpop.f32.mrf.mxu2  ;;  %v1942_v38 = vpop.f32.mrf.mxu3 }
 0x220   : > { %v1943_v13 = vadd.f32 %v1942_v38, %v1853_v9  ;;  %v1548_v4 = vpop.f32.mrf.mxu1  ;;  %v2034_v22 = vpop.f32.mrf.mxu0 }
 0x221   : > { %v1549_v18 = vadd.f32 %v1548_v4, %v3918_v45 }
 0x222   : > { %v2032_v48 = vadd.f32 %v2031_v44, %v1943_v13 }
 0x223   : > { %1587 = vmatmul.bf16.gmra.mxu1 %v3874_v56  ;;  %2073 = vmatmul.bf16.gmra.mxu0 %v3925_v53 }
 0x224   : > { %v4123_v61 = vadd.f32 %v2032_v48, %v1546_v46  ;;  %1895 = vmatmul.bf16.gmra.mxu2 %v3416_v37  ;;  %1984 = vmatmul.bf16.gmra.mxu3 %v3922_v35  ;;  %v4881_v35 = vld [vmem:[#allocation39_spill] sm:$0xff] }
 0x227   : > { %v1856_v31 = vpop.f32.mrf.mxu2  ;;  %v1945_v55 = vpop.f32.mrf.mxu3 }
 0x228   : > { %v1946_v0 = vadd.f32 %v1945_v55, %v1856_v31  ;;  %v1550_v34 = vpop.f32.mrf.mxu1  ;;  %v2036_v41 = vpop.f32.mrf.mxu0 }
 0x229   : > { %v1551_v62 = vadd.f32 %v1550_v34, %v4879_v23 }
 0x22a   : > { %v2035_v10 = vadd.f32 %v2034_v22, %v1946_v0 }
 0x22c   : > { %v4128_v45 = vadd.f32 %v2035_v10, %v1549_v18  ;;  %v4882_v18 = vld [vmem:[#allocation40_spill] sm:$0xff] }
 0x22d   : > { %v193_v10 = vld [vmem:[%s3385_s7 + $0x198] sm:$0xff] }
 0x22f   : > { %v1858_v30 = vpop.f32.mrf.mxu2  ;;  %v1947_v56 = vpop.f32.mrf.mxu3 }
 0x230   : > { %v1948_v14 = vadd.f32 %v1947_v56, %v1858_v30  ;;  %v1553_v16 = vpop.f32.mrf.mxu1  ;;  %v2039_v44 = vpop.f32.mrf.mxu0  ;;  %v194_v30 = vld [vmem:[%s3385_s7 + $0x1a0] sm:$0xff] }
 0x231   : > { %v1554_v46 = vadd.f32 %v1553_v16, %v4880_v36 }
 0x232   : > { %v2037_v37 = vadd.f32 %v2036_v41, %v1948_v14 }
 0x233   : > { %1592 = vmatmul.bf16.gmra.mxu1 %v4877_v42  ;;  %2078 = vmatmul.bf16.gmra.mxu0 %v4881_v35 }
 0x234   : > { %v4133_v12 = vadd.f32 %v2037_v37, %v1551_v62  ;;  %1900 = vmatmul.bf16.gmra.mxu2 %v3484_v17  ;;  %1989 = vmatmul.bf16.gmra.mxu3 %v3954_v33 }
 0x237   : > { %v1861_v9 = vpop.f32.mrf.mxu2  ;;  %v1950_v38 = vpop.f32.mrf.mxu3 }
 0x238   : > { %v1951_v13 = vadd.f32 %v1950_v38, %v1861_v9  ;;  %v1555_v4 = vpop.f32.mrf.mxu1  ;;  %v2041_v22 = vpop.f32.mrf.mxu0  ;;  %v195_v9 = vld [vmem:[%s3385_s7 + $0x1a8] sm:$0x3] }
 0x239   : > { %v1556_v48 = vadd.f32 %v1555_v4, %v4882_v18 }
 0x23a   : > { %v2040_v31 = vadd.f32 %v2039_v44, %v1951_v13 }
 0x23c   : > { %v4138_v55 = vadd.f32 %v2040_v31, %v1554_v46  ;;  %v247_v46 = vpack.c.bf16 %v193_v10, %v193_v10 }
 0x23e   : > { %v1615_v13 = vunpack.c.l.b16 %v247_v46 }
 0x23f   : > { %v1863_v42 = vpop.f32.mrf.mxu2  ;;  %v1952_v0 = vpop.f32.mrf.mxu3 }
 0x240   : > { %v1953_v34 = vadd.f32 %v1952_v0, %v1863_v42  ;;  %v1558_v41 = vpop.f32.mrf.mxu1  ;;  %v2044_v23 = vpop.f32.mrf.mxu0 }
 0x241   : > { %v1559_v17 = vadd.f32 %v1558_v41, %v3969_v15 }
 0x242   : > { %v2042_v33 = vadd.f32 %v2041_v22, %v1953_v34 }
 0x243   : > { %1597 = vmatmul.bf16.gmra.mxu1 %v3925_v53  ;;  %2083 = vmatmul.bf16.gmra.mxu0 %v3977_v24  ;;  %v248_v53 = vpack.c.bf16 %v194_v30, %v194_v30 }
 0x244   : > { %v4143_v62 = vadd.f32 %v2042_v33, %v1556_v48  ;;  %1905 = vmatmul.bf16.gmra.mxu2 %v3546_v63  ;;  %1994 = vmatmul.bf16.gmra.mxu3 %v3974_v29  ;;  %v249_v63 = vpack.c.bf16 %v195_v9, %v195_v9 }
 0x245   : > { %v1616_v4 = vunpack.c.l.b16 %v248_v53 }
 0x246   : > { %v1620_v34 = vunpack.c.l.b16 %v249_v63 }
 0x247   : > { %v1866_v56 = vpop.f32.mrf.mxu2  ;;  %v1955_v14 = vpop.f32.mrf.mxu3  ;;  %v1617_v0 = vpack.c.b16 %v1616_v4, %v1615_v13 }
 0x248   : > { %v1956_v16 = vadd.f32 %v1955_v14, %v1866_v56  ;;  %v1560_v44 = vpop.f32.mrf.mxu1  ;;  %v2046_v36 = vpop.f32.mrf.mxu0 }
 0x249   : > { %v1561_v15 = vadd.f32 %v1560_v44, %v3984_v59 }
 0x24a   : > { %v2045_v37 = vadd.f32 %v2044_v23, %v1956_v16  ;;  %v1621_v23 = vpack.c.b16 %v1620_v34, %v1620_v34  ;;  %v1623_v16 = vshrl.u32 %v1617_v0, 16 }
 0x24c   : > { %v4151_v38 = vadd.f32 %v2045_v37, %v1559_v17  ;;  %v1625_v17 = vshll.u32 %v1617_v0, 16  ;;  %v1636_v46 = vrot.slane %v1621_v23, 1 }
 0x24e   : > { %v1627_v44 = vrot.slane %v1625_v17, 1 }
 0x24f   : > { %v1868_v22 = vpop.f32.mrf.mxu2  ;;  %v1957_v29 = vpop.f32.mrf.mxu3 }
 0x250   : > { %v1958_v18 = vadd.f32 %v1957_v29, %v1868_v22  ;;  %v1563_v48 = vpop.f32.mrf.mxu1  ;;  %v2049_v31 = vpop.f32.mrf.mxu0 }
 0x251   : > { %v1564_v42 = vadd.f32 %v1563_v48, %v3988_v50 }
 0x252   : > { %v2047_v41 = vadd.f32 %v2046_v36, %v1958_v18 }
 0x253   : > { %1602 = vmatmul.bf16.gmra.mxu1 %v4881_v35  ;;  %2088 = vmatmul.bf16.gmra.mxu0 %v3996_v8  ;;  %v1630_v35 = vshll.u32 %v1621_v23, 16 }
 0x254   : > { %v4156_v59 = vadd.f32 %v2047_v41, %v1561_v15  ;;  %1910 = vmatmul.bf16.gmra.mxu2 %v3582_v49  ;;  %1999 = vmatmul.bf16.gmra.mxu3 %v3993_v57  ;;  %v1635_v15 = vrot.slane %v1617_v0, 1  ;;  %v1628_v49 = vor.u32 %v1627_v44, %v1623_v16 }
 0x255   : > { %v1632_v53 = vrot.slane %v1630_v35, 1 }
 0x256   : > { %v1637_v63 = vsel %vm603_vm1, %v1635_v15, %v1636_v46 }
 0x257   : > { %v1871_v33 = vpop.f32.mrf.mxu2  ;;  %v1960_v10 = vpop.f32.mrf.mxu3 }
 0x258   : > { %v1961_v30 = vadd.f32 %v1960_v10, %v1871_v33  ;;  %v1565_v56 = vpop.f32.mrf.mxu1  ;;  %v2051_v50 = vpop.f32.mrf.mxu0 }
 0x259   : > { %v1566_v14 = vadd.f32 %v1565_v56, %v4002_v32  ;;  %v1633_v32 = vsel %vm394_vm0, %v1628_v49, %v1632_v53 }
 0x25a   : > { %v2050_v36 = vadd.f32 %v2049_v31, %v1961_v30 }
 0x25c   : > { %v4161_v8 = vadd.f32 %v2050_v36, %v1564_v42 }
 0x25e   : > { %4883 = vst [vmem:[#allocation20_spill] sm:$0xff] %v4161_v8 }
 0x25f   : > { %v1873_v57 = vpop.f32.mrf.mxu2  ;;  %v1962_v37 = vpop.f32.mrf.mxu3 }
 0x260   : > { %v1963_v9 = vadd.f32 %v1962_v37, %v1873_v57  ;;  %v1568_v13 = vpop.f32.mrf.mxu1  ;;  %v2054_v4 = vpop.f32.mrf.mxu0 }
 0x261   : > { %v1569_v22 = vadd.f32 %v1568_v13, %v4007_v19 }
 0x262   : > { %v2052_v29 = vadd.f32 %v2051_v50, %v1963_v9 }
 0x263   : > { %1607 = vmatmul.bf16.gmra.mxu1 %v3977_v24  ;;  %2093 = vmatmul.bf16.gmra.mxu0 %v1637_v63 }
 0x264   : > { %v4167_v18 = vadd.f32 %v2052_v29, %v1566_v14  ;;  %1915 = vmatmul.bf16.gmra.mxu2 %v1617_v0  ;;  %2004 = vmatmul.bf16.gmra.mxu3 %v1633_v32 }
 0x266   : > { %4884 = vst [vmem:[#allocation10_spill] sm:$0xff] %v4167_v18 }
 0x267   : > { %v1876_v48 = vpop.f32.mrf.mxu2  ;;  %v1965_v31 = vpop.f32.mrf.mxu3 }
 0x268   : > { %v1966_v42 = vadd.f32 %v1965_v31, %v1876_v48  ;;  %v1570_v34 = vpop.f32.mrf.mxu1  ;;  %v2056_v41 = vpop.f32.mrf.mxu0 }
 0x269   : > { %v1571_v23 = vadd.f32 %v1570_v34, %v4014_v51 }
 0x26a   : > { %v2055_v17 = vadd.f32 %v2054_v4, %v1966_v42 }
 0x26c   : > { %v4170_v33 = vadd.f32 %v2055_v17, %v1569_v22 }
 0x26f   : > { %v1878_v19 = vpop.f32.mrf.mxu2  ;;  %v1967_v10 = vpop.f32.mrf.mxu3 }
 0x270   : > { %v1968_v30 = vadd.f32 %v1967_v10, %v1878_v19  ;;  %v1573_v56 = vpop.f32.mrf.mxu1  ;;  %v2059_v24 = vpop.f32.mrf.mxu0 }
 0x271   : > { %v1574_v50 = vadd.f32 %v1573_v56, %v4017_v28 }
 0x272   : > { %v2057_v14 = vadd.f32 %v2056_v41, %v1968_v30 }
 0x274   : > { %v4173_v0 = vadd.f32 %v2057_v14, %v1571_v23 }
 0x277   : > { %v1881_v16 = vpop.f32.mrf.mxu2  ;;  %v1970_v44 = vpop.f32.mrf.mxu3 }
 0x278   : > { %v1971_v35 = vadd.f32 %v1970_v44, %v1881_v16  ;;  %v1575_v36 = vpop.f32.mrf.mxu1  ;;  %v2061_v15 = vpop.f32.mrf.mxu0 }
 0x279   : > { %v1576_v51 = vadd.f32 %v1575_v36, %v4024_v54  ;;  %v2170_v36 = vmul.f32 %v4103_v58, %v4103_v58 }
 0x27a   : > { %v2060_v46 = vadd.f32 %v2059_v24, %v1971_v35 }
 0x27c   : > { %v4176_v49 = vadd.f32 %v2060_v46, %v1574_v50  ;;  %v2171_v46 = vmul.f32 %v4108_v43, %v4108_v43 }
 0x27f   : > { %v1883_v53 = vpop.f32.mrf.mxu2  ;;  %v1972_v57 = vpop.f32.mrf.mxu3 }
 0x280   : > { %v1973_v37 = vadd.f32 %v1972_v57, %v1883_v53  ;;  %v1578_v9 = vpop.f32.mrf.mxu1  ;;  %v2064_v13 = vpop.f32.mrf.mxu0 }
 0x281   : > { %v1579_v28 = vadd.f32 %v1578_v9, %v4027_v5 }
 0x282   : > { %v2062_v4 = vadd.f32 %v2061_v15, %v1973_v37  ;;  %v2131_v37 = vadd.f32 %v4103_v58, %v4098_v3 }
 0x284   : > { %v4179_v63 = vadd.f32 %v2062_v4, %v1576_v51 }
 0x287   : > { %v1886_v22 = vpop.f32.mrf.mxu2  ;;  %v1975_v32 = vpop.f32.mrf.mxu3 }
 0x288   : > { %v1976_v29 = vadd.f32 %v1975_v32, %v1886_v22  ;;  %v1580_v48 = vpop.f32.mrf.mxu1  ;;  %v2066_v31 = vpop.f32.mrf.mxu0  ;;  %v2173_v22 = vmul.f32 %v4118_v39, %v4118_v39 }
 0x289   : > { %v1581_v54 = vadd.f32 %v1580_v48, %v4034_v27  ;;  %v2174_v48 = vmul.f32 %v4123_v61, %v4123_v61 }
 0x28a   : > { %v2065_v42 = vadd.f32 %v2064_v13, %v1976_v29  ;;  %v2172_v13 = vmul.f32 %v4113_v25, %v4113_v25 }
 0x28c   : > { %v4182_v34 = vadd.f32 %v2065_v42, %v1579_v28  ;;  %v2132_v28 = vadd.f32 %v2131_v37, %v4108_v43 }
 0x28e   : > { %v2133_v32 = vadd.f32 %v2132_v28, %v4113_v25  ;;  %v2179_v28 = vmul.f32 %v4151_v38, %v4151_v38 }
 0x28f   : > { %v1888_v41 = vpop.f32.mrf.mxu2  ;;  %v1977_v23 = vpop.f32.mrf.mxu3 }
 0x290   : > { %v1978_v17 = vadd.f32 %v1977_v23, %v1888_v41  ;;  %v1583_v19 = vpop.f32.mrf.mxu1  ;;  %v2069_v10 = vpop.f32.mrf.mxu0  ;;  %v2134_v42 = vadd.f32 %v2133_v32, %v4118_v39  ;;  %v2175_v23 = vmul.f32 %v4128_v45, %v4128_v45 }
 0x291   : > { %v1584_v5 = vadd.f32 %v1583_v19, %v4037_v2  ;;  %v2169_v2 = vmul.f32 %v4098_v3, %v4098_v3 }
 0x292   : > { %v2067_v30 = vadd.f32 %v2066_v31, %v1978_v17 }
 0x293   : > { %v2201_v9 = vadd.f32 %v2170_v36, %v2169_v2  ;;  %v2178_v2 = vmul.f32 %v4143_v62, %v4143_v62 }
 0x294   : > { %v4185_v56 = vadd.f32 %v2067_v30, %v1581_v54  ;;  %v2176_v30 = vmul.f32 %v4133_v12, %v4133_v12 }
 0x295   : > { %v2202_v4 = vadd.f32 %v2201_v9, %v2171_v46 }
 0x297   : > { %v1891_v24 = vpop.f32.mrf.mxu2  ;;  %v1980_v50 = vpop.f32.mrf.mxu3  ;;  %v2203_v29 = vadd.f32 %v2202_v4, %v2172_v13 }
 0x298   : > { %v1981_v14 = vadd.f32 %v1980_v50, %v1891_v24  ;;  %v4187_v16 = vpop.f32.mrf.mxu1  ;;  %v4189_v44 = vpop.f32.mrf.mxu0 }
 0x299   : > { %v2204_v41 = vadd.f32 %v2203_v29, %v2173_v22 }
 0x29a   : > { %v2070_v27 = vadd.f32 %v2069_v10, %v1981_v14  ;;  %v2135_v10 = vadd.f32 %v2134_v42, %v4123_v61  ;;  %v2177_v14 = vmul.f32 %v4138_v55, %v4138_v55 }
 0x29c   : > { %v4191_v35 = vadd.f32 %v2070_v27, %v1584_v5  ;;  %v2205_v5 = vadd.f32 %v2204_v41, %v2174_v48  ;;  %v2136_v24 = vadd.f32 %v2135_v10, %v4128_v45  ;;  %v2180_v48 = vmul.f32 %v4156_v59, %v4156_v59 }
 0x29e   : > { %v2206_v50 = vadd.f32 %v2205_v5, %v2175_v23  ;;  %v2137_v27 = vadd.f32 %v2136_v24, %v4133_v12  ;;  %v2181_v23 = vmul.f32 %v4161_v8, %v4161_v8 }
 0x29f   : > { %v1893_v15 = vpop.f32.mrf.mxu2  ;;  %v1982_v51 = vpop.f32.mrf.mxu3 }
 0x2a0   : > { %v4199_v53 = vpop.f32.mrf.mxu1  ;;  %v4201_v57 = vpop.f32.mrf.mxu0  ;;  %v2207_v36 = vadd.f32 %v2206_v50, %v2176_v30  ;;  %v2138_v9 = vadd.f32 %v2137_v27, %v4138_v55  ;;  %v2182_v30 = vmul.f32 %v4167_v18, %v4167_v18 }
 0x2a2   : > { %v2208_v13 = vadd.f32 %v2207_v36, %v2177_v14  ;;  %v2139_v32 = vadd.f32 %v2138_v9, %v4143_v62  ;;  %v2183_v36 = vmul.f32 %v4170_v33, %v4170_v33 }
 0x2a4   : > { %v2209_v29 = vadd.f32 %v2208_v13, %v2178_v2  ;;  %v2140_v42 = vadd.f32 %v2139_v32, %v4151_v38  ;;  %v2184_v32 = vmul.f32 %v4173_v0, %v4173_v0 }
 0x2a6   : > { %v2210_v41 = vadd.f32 %v2209_v29, %v2179_v28  ;;  %v2141_v10 = vadd.f32 %v2140_v42, %v4156_v59  ;;  %v1983_v29 = vadd.f32 %v1982_v51, %v1893_v15 }
 0x2a7   : > { %v1896_v31 = vpop.f32.mrf.mxu2  ;;  %v1985_v54 = vpop.f32.mrf.mxu3 }
 0x2a8   : > { %v4216_v17 = vpop.f32.mrf.mxu1  ;;  %v2076_v19 = vpop.f32.mrf.mxu0  ;;  %v2211_v5 = vadd.f32 %v2210_v41, %v2180_v48  ;;  %v2142_v14 = vadd.f32 %v2141_v10, %v4161_v8  ;;  %v2185_v41 = vmul.f32 %v4176_v49, %v4176_v49  ;;  %v1986_v10 = vadd.f32 %v1985_v54, %v1896_v31 }
 0x2a9   : > { %v2186_v8 = vmul.f32 %v4179_v63, %v4179_v63  ;;  %v1586_v31 = vadd.f32 %v4187_v16, %v4044_v11  ;;  %v2189_v11 = vmul.f32 %v4191_v35, %v4191_v35 }
 0x2aa   : > { %v2212_v27 = vadd.f32 %v2211_v5, %v2181_v23  ;;  %v2143_v13 = vadd.f32 %v2142_v14, %v4167_v18  ;;  %v2072_v14 = vadd.f32 %v4189_v44, %v1983_v29  ;;  %v2075_v54 = vadd.f32 %v4201_v57, %v1986_v10 }
 0x2ab   : > { %v1589_v29 = vadd.f32 %v4199_v53, %v4047_v60 }
 0x2ac   : > { %v2213_v28 = vadd.f32 %v2212_v27, %v2182_v30  ;;  %v2144_v48 = vadd.f32 %v2143_v13, %v4170_v33 }
 0x2ad   : > { %v4268_v16 = vadd.f32 %v2075_v54, %v1589_v29 }
 0x2ae   : > { %v2214_v42 = vadd.f32 %v2213_v28, %v2183_v36  ;;  %v2145_v23 = vadd.f32 %v2144_v48, %v4173_v0  ;;  %v2187_v36 = vmul.f32 %v4182_v34, %v4182_v34 }
 0x2af   : > { %v1898_v46 = vpop.f32.mrf.mxu2  ;;  %v1987_v37 = vpop.f32.mrf.mxu3 }
 0x2b0   : > { %v1593_v4 = vpop.f32.mrf.mxu1  ;;  %v2079_v22 = vpop.f32.mrf.mxu0  ;;  %v2215_v5 = vadd.f32 %v2214_v42, %v2184_v32  ;;  %v1988_v30 = vadd.f32 %v1987_v37, %v1898_v46  ;;  %v2146_v15 = vadd.f32 %v2145_v23, %v4176_v49  ;;  %v2188_v46 = vmul.f32 %v4185_v56, %v4185_v56 }
 0x2b1   : > { %v4261_v37 = vadd.f32 %v2072_v14, %v1586_v31 }
 0x2b2   : > { %v2216_v51 = vadd.f32 %v2215_v5, %v2185_v41  ;;  %v2147_v48 = vadd.f32 %v2146_v15, %v4179_v63  ;;  %v2077_v42 = vadd.f32 %v2076_v19, %v1988_v30  ;;  %v1594_v19 = vadd.f32 %v1593_v4, %v4057_v26 }
 0x2b3   : > { %v2190_v60 = vmul.f32 %v4261_v37, %v4261_v37 }
 0x2b4   : > { %v2217_v44 = vadd.f32 %v2216_v51, %v2186_v8  ;;  %v2148_v41 = vadd.f32 %v2147_v48, %v4182_v34  ;;  %v1591_v8 = vadd.f32 %v4216_v17, %v4054_v40  ;;  %v2191_v17 = vmul.f32 %v4268_v16, %v4268_v16 }
 0x2b6   : > { %v2218_v23 = vadd.f32 %v2217_v44, %v2187_v36  ;;  %v4275_v53 = vadd.f32 %v2077_v42, %v1591_v8 }
 0x2b7   : > { %v1901_v24 = vpop.f32.mrf.mxu2  ;;  %v1990_v50 = vpop.f32.mrf.mxu3 }
 0x2b8   : > { %v1595_v2 = vpop.f32.mrf.mxu1  ;;  %v2081_v9 = vpop.f32.mrf.mxu0  ;;  %v1991_v32 = vadd.f32 %v1990_v50, %v1901_v24  ;;  %v2149_v24 = vadd.f32 %v2148_v41, %v4185_v56  ;;  %v2219_v50 = vadd.f32 %v2218_v23, %v2188_v46  ;;  %v2192_v4 = vmul.f32 %v4275_v53, %v4275_v53 }
 0x2b9   : > { %v1596_v31 = vadd.f32 %v1595_v2, %v4064_v6 }
 0x2ba   : > { %v2080_v57 = vadd.f32 %v2079_v22, %v1991_v32  ;;  %v2150_v14 = vadd.f32 %v2149_v24, %v4191_v35  ;;  %v2220_v40 = vadd.f32 %v2219_v50, %v2189_v11 }
 0x2bc   : > { %v4281_v22 = vadd.f32 %v2080_v57, %v1594_v19  ;;  %v2151_v36 = vadd.f32 %v2150_v14, %v4261_v37  ;;  %v2221_v26 = vadd.f32 %v2220_v40, %v2190_v60 }
 0x2be   : > { %v2222_v44 = vadd.f32 %v2221_v26, %v2191_v17  ;;  %v2193_v46 = vmul.f32 %v4281_v22, %v4281_v22 }
 0x2bf   : > { %v1903_v27 = vpop.f32.mrf.mxu2  ;;  %v1992_v18 = vpop.f32.mrf.mxu3 }
 0x2c0   : > { %v1598_v13 = vpop.f32.mrf.mxu1  ;;  %v2084_v28 = vpop.f32.mrf.mxu0  ;;  %v1993_v5 = vadd.f32 %v1992_v18, %v1903_v27  ;;  %v2223_v6 = vadd.f32 %v2222_v44, %v2192_v4 }
 0x2c1   : > { %v1599_v48 = vadd.f32 %v1598_v13, %v4067_v21 }
 0x2c2   : > { %v2082_v30 = vadd.f32 %v2081_v9, %v1993_v5  ;;  %v2152_v9 = vadd.f32 %v2151_v36, %v4268_v16  ;;  %v2224_v8 = vadd.f32 %v2223_v6, %v2193_v46 }
 0x2c4   : > { %v4288_v32 = vadd.f32 %v2082_v30, %v1596_v31  ;;  %v2153_v29 = vadd.f32 %v2152_v9, %v4275_v53 }
 0x2c6   : > { %v2154_v41 = vadd.f32 %v2153_v29, %v4281_v22  ;;  %v2194_v23 = vmul.f32 %v4288_v32, %v4288_v32 }
 0x2c7   : > { %v1906_v18 = vpop.f32.mrf.mxu2  ;;  %v1995_v10 = vpop.f32.mrf.mxu3 }
 0x2c8   : > { %v1996_v27 = vadd.f32 %v1995_v10, %v1906_v18  ;;  %v1600_v15 = vpop.f32.mrf.mxu1  ;;  %v2086_v51 = vpop.f32.mrf.mxu0  ;;  %v2155_v21 = vadd.f32 %v2154_v41, %v4288_v32  ;;  %v2225_v60 = vadd.f32 %v2224_v8, %v2194_v23 }
 0x2c9   : > { %v1601_v57 = vadd.f32 %v1600_v15, %v4074_v7 }
 0x2ca   : > { %v2085_v54 = vadd.f32 %v2084_v28, %v1996_v27 }
 0x2cc   : > { %v4294_v42 = vadd.f32 %v2085_v54, %v1599_v48 }
 0x2ce   : > { %v2195_v13 = vmul.f32 %v4294_v42, %v4294_v42  ;;  %v2156_v19 = vadd.f32 %v2155_v21, %v4294_v42 }
 0x2cf   : > { %v1908_v2 = vpop.f32.mrf.mxu2  ;;  %v1997_v28 = vpop.f32.mrf.mxu3 }
 0x2d0   : > { %v1998_v5 = vadd.f32 %v1997_v28, %v1908_v2  ;;  %v1603_v11 = vpop.f32.mrf.mxu1  ;;  %v2089_v50 = vpop.f32.mrf.mxu0  ;;  %v2226_v10 = vadd.f32 %v2225_v60, %v2195_v13 }
 0x2d1   : > { %v1604_v31 = vadd.f32 %v1603_v11, %v4077_v47 }
 0x2d2   : > { %v2087_v24 = vadd.f32 %v2086_v51, %v1998_v5 }
 0x2d4   : > { %v4304_v18 = vadd.f32 %v2087_v24, %v1601_v57 }
 0x2d6   : > { %v2157_v14 = vadd.f32 %v2156_v19, %v4304_v18  ;;  %v2196_v30 = vmul.f32 %v4304_v18, %v4304_v18 }
 0x2d7   : > { %v1911_v27 = vpop.f32.mrf.mxu2  ;;  %v2000_v40 = vpop.f32.mrf.mxu3 }
 0x2d8   : > { %v2227_v17 = vadd.f32 %v2226_v10, %v2196_v30  ;;  %v2001_v36 = vadd.f32 %v2000_v40, %v1911_v27  ;;  %v1605_v15 = vpop.f32.mrf.mxu1  ;;  %v2091_v54 = vpop.f32.mrf.mxu0 }
 0x2d9   : > { %v1606_v29 = vadd.f32 %v1605_v15, %v4084_v52 }
 0x2da   : > { %v2090_v7 = vadd.f32 %v2089_v50, %v2001_v36 }
 0x2dc   : > { %v4310_v51 = vadd.f32 %v2090_v7, %v1604_v31 }
 0x2de   : > { %v2158_v26 = vadd.f32 %v2157_v14, %v4310_v51  ;;  %v2197_v4 = vmul.f32 %v4310_v51, %v4310_v51 }
 0x2df   : > { %v1913_v9 = vpop.f32.mrf.mxu2  ;;  %v2002_v48 = vpop.f32.mrf.mxu3 }
 0x2e0   : > { %v2228_v44 = vadd.f32 %v2227_v17, %v2197_v4  ;;  %v2003_v46 = vadd.f32 %v2002_v48, %v1913_v9  ;;  %v1608_v47 = vpop.f32.mrf.mxu1  ;;  %v2094_v23 = vpop.f32.mrf.mxu0 }
 0x2e1   : > { %v1609_v13 = vadd.f32 %v1608_v47, %v4087_v1 }
 0x2e2   : > { %v2092_v6 = vadd.f32 %v2091_v54, %v2003_v46 }
 0x2e4   : > { %v4316_v2 = vadd.f32 %v2092_v6, %v1606_v29 }
 0x2e6   : > { %v2159_v28 = vadd.f32 %v2158_v26, %v4316_v2  ;;  %v2198_v41 = vmul.f32 %v4316_v2, %v4316_v2 }
 0x2e7   : > { %v1916_v5 = vpop.f32.mrf.mxu2  ;;  %v2005_v11 = vpop.f32.mrf.mxu3 }
 0x2e8   : > { %v2229_v8 = vadd.f32 %v2228_v44, %v2198_v41  ;;  %v2006_v21 = vadd.f32 %v2005_v11, %v1916_v5  ;;  %v1610_v60 = vpop.f32.mrf.mxu1  ;;  %v2096_v27 = vpop.f32.mrf.mxu0 }
 0x2e9   : > { %v1611_v40 = vadd.f32 %v1610_v60, %v4095_v20 }
 0x2ea   : > { %v2095_v57 = vadd.f32 %v2094_v23, %v2006_v21 }
 0x2ec   : > { %v4322_v24 = vadd.f32 %v2095_v57, %v1609_v13 }
 0x2ee   : > { %v2160_v52 = vadd.f32 %v2159_v28, %v4322_v24  ;;  %v2199_v50 = vmul.f32 %v4322_v24, %v4322_v24 }
 0x2ef   : > { %v1918_v19 = vpop.f32.mrf.mxu2  ;;  %v2007_v10 = vpop.f32.mrf.mxu3 }
 0x2f0   : > { %v2230_v14 = vadd.f32 %v2229_v8, %v2199_v50  ;;  %v2008_v30 = vadd.f32 %v2007_v10, %v1918_v19 }
 0x2f2   : > { %v2097_v17 = vadd.f32 %v2096_v27, %v2008_v30 }
 0x2f4   : > { %v4328_v36 = vadd.f32 %v2097_v17, %v1611_v40 }
 0x2f6   : > { %v2161_v1 = vadd.f32 %v2160_v52, %v4328_v36  ;;  %v2200_v31 = vmul.f32 %v4328_v36, %v4328_v36 }
 0x2f8   : > { %v2162_v7 = vrot.slane %v2161_v1, 4  ;;  %v2231_v15 = vadd.f32 %v2230_v14, %v2200_v31 }
 0x2fa   : > { %v2163_v54 = vadd.f32 %v2162_v7, %v2161_v1  ;;  %v2232_v26 = vrot.slane %v2231_v15, 4 }
 0x2fc   : > { %v2164_v4 = vrot.slane %v2163_v54, 2  ;;  %v2233_v9 = vadd.f32 %v2232_v26, %v2231_v15 }
 0x2fe   : > { %v2165_v48 = vadd.f32 %v2164_v4, %v2163_v54  ;;  %v2234_v44 = vrot.slane %v2233_v9, 2 }
 0x300   : > { %v2166_v46 = vrot.slane %v2165_v48, 1  ;;  %v2235_v29 = vadd.f32 %v2234_v44, %v2233_v9 }
 0x302   : > { %v2167_v6 = vadd.f32 %v2166_v46, %v2165_v48  ;;  %v2236_v20 = vrot.slane %v2235_v29, 1 }
 0x304   : > { %v4333_v47 = vmul.f32 0.00390625, %v2167_v6  ;;  %v2237_v28 = vadd.f32 %v2236_v20, %v2235_v29 }
 0x306   : > { %v2238_v41 = vmul.f32 0.00390625, %v2237_v28  ;;  %v2239_v23 = vmul.f32 %v4333_v47, %v4333_v47  ;;  %v2272_v5 = vsub.f32 %v4322_v24, %v4333_v47  ;;  %v2273_v11 = vsub.f32 %v4328_v36, %v4333_v47 }
 0x307   : > { %v2268_v57 = vsub.f32 %v4294_v42, %v4333_v47  ;;  %v2269_v52 = vsub.f32 %v4304_v18, %v4333_v47  ;;  %v2270_v50 = vsub.f32 %v4310_v51, %v4333_v47  ;;  %v2271_v60 = vsub.f32 %v4316_v2, %v4333_v47 }
 0x308   : > { %v2240_v8 = vsub.f32 %v2238_v41, %v2239_v23  ;;  %v2242_v14 = vsub.f32 %v4098_v3, %v4333_v47  ;;  %v2243_v30 = vsub.f32 %v4103_v58, %v4333_v47  ;;  %v2244_v27 = vsub.f32 %v4108_v43, %v4333_v47 }
 0x309   : > { %v2245_v40 = vsub.f32 %v4113_v25, %v4333_v47  ;;  %v2246_v36 = vsub.f32 %v4118_v39, %v4333_v47  ;;  %v2247_v1 = vsub.f32 %v4123_v61, %v4333_v47  ;;  %v2248_v31 = vsub.f32 %v4128_v45, %v4333_v47  ;;  %v4885_v45 = vld [vmem:[#allocation20_spill] sm:$0xff] }
 0x30a   : > { %v2241_v21 = vmax.f32 %v2240_v8, 0.0  ;;  %v2249_v3 = vsub.f32 %v4133_v12, %v4333_v47  ;;  %v2250_v58 = vsub.f32 %v4138_v55, %v4333_v47  ;;  %v2251_v43 = vsub.f32 %v4143_v62, %v4333_v47  ;;  %v4886_v12 = vld [vmem:[#allocation10_spill] sm:$0xff] }
 0x30b   : > { %v2252_v25 = vsub.f32 %v4151_v38, %v4333_v47  ;;  %v2253_v61 = vsub.f32 %v4156_v59, %v4333_v47  ;;  %v2254_v7 = vsub.f32 %v4885_v45, %v4333_v47  ;;  %v2255_v15 = vsub.f32 %v4886_v12, %v4333_v47 }
 0x30c   : > { %v2274_v13 = vadd.f32 1e-05, %v2241_v21  ;;  %v2256_v55 = vsub.f32 %v4170_v33, %v4333_v47  ;;  %v2257_v62 = vsub.f32 %v4173_v0, %v4333_v47  ;;  %v2258_v38 = vsub.f32 %v4176_v49, %v4333_v47 }
 0x30d   : > { %v2259_v59 = vsub.f32 %v4179_v63, %v4333_v47  ;;  %v2260_v26 = vsub.f32 %v4182_v34, %v4333_v47  ;;  %v2261_v4 = vsub.f32 %v4185_v56, %v4333_v47  ;;  %v2262_v33 = vsub.f32 %v4191_v35, %v4333_v47 }
 0x30e   : > { %3186 = vrsqrt.f32 %v2274_v13  ;;  %vm2281_vm4 = vweird.f32 %v2274_v13  ;;  %v2263_v0 = vsub.f32 %v4261_v37, %v4333_v47  ;;  %v2264_v49 = vsub.f32 %v4268_v16, %v4333_v47 }
 0x30f   : > { %v2265_v63 = vsub.f32 %v4275_v53, %v4333_v47  ;;  %v2266_v34 = vsub.f32 %v4281_v22, %v4333_v47  ;;  %v2267_v56 = vsub.f32 %v4288_v32, %v4333_v47 }
 0x314   : > { %v3187_v24 = vpop.eup %3186 }
 0x315   : > { %v2276_v19 = vmul.f32 %v3187_v24, %v2274_v13  ;;  %vm2282_vm3 = vweird.f32 %v3187_v24 }
 0x316   : > { %vm2283_vm5 = vmor %vm2281_vm4, %vm2282_vm3 }
 0x317   : > { %v2277_v10 = vmul.f32 %v3187_v24, %v2276_v19 }
 0x319   : > { %v2278_v17 = vmul.f32 0.5, %v2277_v10 }
 0x31b   : > { %v2279_v39 = vsub.f32 1.5, %v2278_v17  ;;  %v3189_v17 = vld [vmem:[%s3385_s7 + $0x180] sm:$0xff] }
 0x31d   : > { %v2280_v54 = vmul.f32 %v3187_v24, %v2279_v39 }
 0x31f   : > { %v2284_v9 = vsel %vm2283_vm5, %v3187_v24, %v2280_v54 }
 0x320   : > { %v2315_v48 = vmul.f32 %v2284_v9, %v2272_v5  ;;  %v2316_v35 = vmul.f32 %v2284_v9, %v2273_v11  ;;  %v4402_v44 = vmul.f32 %v2284_v9, %v2242_v14  ;;  %v4404_v46 = vmul.f32 %v2284_v9, %v2243_v30 }
 0x321   : > { %v4406_v37 = vmul.f32 %v2284_v9, %v2244_v27  ;;  %v4408_v16 = vmul.f32 %v2284_v9, %v2245_v40  ;;  %v4410_v29 = vmul.f32 %v2284_v9, %v2246_v36  ;;  %v4412_v6 = vmul.f32 %v2284_v9, %v2247_v1  ;;  %v3188_v27 = vld [vmem:[%s3385_s7 + $0x190] sm:$0x3] }
 0x322   : > { %v2347_v53 = vmax.f32 %v2315_v48, 0.0  ;;  %v2348_v22 = vmax.f32 %v2316_v35, 0.0  ;;  %v4416_v32 = vmul.f32 %v2284_v9, %v2248_v31  ;;  %v4418_v20 = vmul.f32 %v2284_v9, %v2249_v3  ;;  %v3190_v31 = vld [vmem:[%s3385_s7 + $0x188] sm:$0xff] }
 0x323   : > { %v4420_v28 = vmul.f32 %v2284_v9, %v2250_v58  ;;  %v4422_v41 = vmul.f32 %v2284_v9, %v2251_v43  ;;  %v4424_v23 = vmul.f32 %v2284_v9, %v2252_v25  ;;  %v4426_v5 = vmul.f32 %v2284_v9, %v2253_v61 }
 0x324   : > { %v2427_v11 = vrot.slane %v2347_v53, 7  ;;  %v2428_v8 = vrot.slane %v2348_v22, 7  ;;  %v4428_v21 = vmul.f32 %v2284_v9, %v2254_v7  ;;  %v4430_v13 = vmul.f32 %v2284_v9, %v2255_v15 }
 0x325   : > { %v4432_v24 = vmul.f32 %v2284_v9, %v2256_v55  ;;  %v4434_v19 = vmul.f32 %v2284_v9, %v2257_v62  ;;  %v4436_v10 = vmul.f32 %v2284_v9, %v2258_v38  ;;  %v4438_v14 = vmul.f32 %v2284_v9, %v2259_v59 }
 0x326   : > { %v2429_v30 = vsel %vm2381_vm2, %v2427_v11, %v2428_v8  ;;  %v2525_v40 = vadd.f32 %v3188_v27, %v2428_v8  ;;  %v2523_v36 = vadd.f32 %v3189_v17, %v2427_v11  ;;  %v4443_v1 = vmul.f32 %v2284_v9, %v2260_v26 }
 0x327   : > { %v2524_v3 = vadd.f32 %v3190_v31, %v2429_v30  ;;  %v4446_v58 = vmul.f32 %v2284_v9, %v2261_v4  ;;  %v4448_v43 = vmul.f32 %v2284_v9, %v2262_v33  ;;  %v4450_v25 = vmul.f32 %v2284_v9, %v2263_v0 }
 0x328   : > { %2573 = vst [vmem:[%s4452_s27 + $0xff] sm:$0x1] %v2525_v40  ;;  %v4455_v39 = vmul.f32 %v2284_v9, %v2264_v49  ;;  %v4457_v61 = vmul.f32 %v2284_v9, %v2265_v63  ;;  %v4459_v45 = vmul.f32 %v2284_v9, %v2266_v34  ;;  %v4461_v7 = vmul.f32 %v2284_v9, %v2267_v56 }
 0x329   : > { %2572 = vst [vmem:[%s4452_s27 + $0xf7] sm:$0xff] %v2524_v3  ;;  %v4467_v12 = vmul.f32 %v2284_v9, %v2268_v57  ;;  %v4472_v15 = vmul.f32 %v2284_v9, %v2269_v52  ;;  %v4477_v55 = vmul.f32 %v2284_v9, %v2270_v50  ;;  %v4482_v62 = vmul.f32 %v2284_v9, %v2271_v60 }
 0x32a   : > { %v2317_v38 = vmax.f32 %v4402_v44, 0.0  ;;  %v2318_v42 = vmax.f32 %v4404_v46, 0.0  ;;  %v2319_v57 = vmax.f32 %v4406_v37, 0.0  ;;  %v2320_v18 = vmax.f32 %v4408_v16, 0.0  ;;  %2571 = vst [vmem:[%s4452_s27 + $0xef] sm:$0xfe] %v2523_v36 }
 0x32b   : > { %v2321_v52 = vmax.f32 %v4410_v29, 0.0  ;;  %v2322_v51 = vmax.f32 %v4412_v6, 0.0  ;;  %v2323_v50 = vmax.f32 %v4416_v32, 0.0  ;;  %v2324_v54 = vmax.f32 %v4418_v20, 0.0 }
 0x32c   : > { %v2325_v2 = vmax.f32 %v4420_v28, 0.0  ;;  %v2326_v47 = vmax.f32 %v4422_v41, 0.0  ;;  %v2327_v60 = vmax.f32 %v4424_v23, 0.0  ;;  %v2328_v59 = vmax.f32 %v4426_v5, 0.0 }
 0x32d   : > { %v2329_v26 = vmax.f32 %v4428_v21, 0.0  ;;  %v2330_v4 = vmax.f32 %v4430_v13, 0.0  ;;  %v2331_v33 = vmax.f32 %v4432_v24, 0.0  ;;  %v2332_v0 = vmax.f32 %v4434_v19, 0.0 }
 0x32e   : > { %v2333_v49 = vmax.f32 %v4436_v10, 0.0  ;;  %v2334_v9 = vmax.f32 %v4438_v14, 0.0  ;;  %v2335_v63 = vmax.f32 %v4443_v1, 0.0  ;;  %v2336_v34 = vmax.f32 %v4446_v58, 0.0 }
 0x32f   : > { %v2337_v56 = vmax.f32 %v4448_v43, 0.0  ;;  %v2338_v48 = vmax.f32 %v4450_v25, 0.0  ;;  %v2339_v35 = vmax.f32 %v4455_v39, 0.0  ;;  %v2340_v44 = vmax.f32 %v4457_v61, 0.0 }
 0x330   : > { %v2341_v46 = vmax.f32 %v4459_v45, 0.0  ;;  %v2342_v37 = vmax.f32 %v4461_v7, 0.0  ;;  %v2343_v16 = vmax.f32 %v4467_v12, 0.0  ;;  %v2344_v29 = vmax.f32 %v4472_v15, 0.0 }
 0x331   : > { %v2345_v6 = vmax.f32 %v4477_v55, 0.0  ;;  %v2346_v53 = vmax.f32 %v4482_v62, 0.0  ;;  %v2382_v22 = vrot.slane %v2317_v38, 7  ;;  %v2383_v32 = vrot.slane %v2318_v42, 7 }
 0x332   : > { %v2385_v20 = vrot.slane %v2319_v57, 7  ;;  %v2386_v28 = vrot.slane %v2320_v18, 7  ;;  %v2388_v41 = vrot.slane %v2321_v52, 7  ;;  %v2389_v23 = vrot.slane %v2322_v51, 7 }
 0x333   : > { %v2384_v5 = vsel %vm2381_vm2, %v2382_v22, %v2383_v32  ;;  %v2391_v11 = vrot.slane %v2323_v50, 7  ;;  %v4516_v8 = vrot.slane %v2324_v54, 7  ;;  %v4518_v21 = vrot.slane %v2325_v2, 7 }
 0x334   : > { %v2387_v13 = vsel %vm2381_vm2, %v2385_v20, %v2386_v28  ;;  %v2390_v24 = vsel %vm2381_vm2, %v2388_v41, %v2389_v23  ;;  %v4522_v19 = vrot.slane %v2326_v47, 7  ;;  %v4524_v10 = vrot.slane %v2327_v60, 7  ;;  %v3191_v47 = vld [vmem:[%s3385_s7 + $0x18] sm:$0xff] }
 0x335   : > { %v2393_v14 = vsel %vm2381_vm2, %v2391_v11, %v4516_v8  ;;  %v4528_v30 = vrot.slane %v2328_v59, 7  ;;  %v4530_v27 = vrot.slane %v2329_v26, 7  ;;  %v4532_v40 = vrot.slane %v2330_v4, 7  ;;  %v3192_v59 = vld [vmem:[%s3385_s7 + $0x20] sm:$0xff]  ;;  %v3193_v4 = vld [vmem:[%s3385_s7 + $0x28] sm:$0x3] }
 0x336   : > { %v4537_v17 = vsel %vm2381_vm2, %v4518_v21, %v4522_v19  ;;  %v4539_v36 = vrot.slane %v2331_v33, 7  ;;  %v4541_v1 = vrot.slane %v2332_v0, 7  ;;  %v4543_v31 = vrot.slane %v2333_v49, 7 }
 0x337   : > { %v4548_v3 = vsel %vm2381_vm2, %v4524_v10, %v4528_v30  ;;  %v4553_v58 = vsel %vm2381_vm2, %v4530_v27, %v4532_v40  ;;  %v4555_v43 = vrot.slane %v2334_v9, 7  ;;  %v4557_v25 = vrot.slane %v2335_v63, 7  ;;  %v3194_v9 = vld [vmem:[%s3385_s7 + $0x30] sm:$0xff] }
 0x338   : > { %v4562_v39 = vsel %vm2381_vm2, %v4539_v36, %v4541_v1  ;;  %v4564_v61 = vrot.slane %v2336_v34, 7  ;;  %v4566_v45 = vrot.slane %v2337_v56, 7  ;;  %v4568_v7 = vrot.slane %v2338_v48, 7  ;;  %v3195_v34 = vld [vmem:[%s3385_s7 + $0x38] sm:$0xff]  ;;  %v3196_v48 = vld [vmem:[%s3385_s7 + $0x40] sm:$0x3] }
 0x339   : > { %v4573_v12 = vsel %vm2381_vm2, %v4543_v31, %v4555_v43  ;;  %v4575_v15 = vrot.slane %v2339_v35, 7  ;;  %v4577_v55 = vrot.slane %v2340_v44, 7  ;;  %v4579_v62 = vrot.slane %v2341_v46, 7  ;;  %v3197_v44 = vld [vmem:[%s3385_s7 + $0x48] sm:$0xff] }
 0x33a   : > { %v4584_v38 = vsel %vm2381_vm2, %v4557_v25, %v4564_v61  ;;  %v4589_v42 = vsel %vm2381_vm2, %v4566_v45, %v4568_v7  ;;  %v4591_v57 = vrot.slane %v2342_v37, 7  ;;  %v4593_v18 = vrot.slane %v2343_v16, 7  ;;  %v3198_v37 = vld [vmem:[%s3385_s7 + $0x50] sm:$0xff] }
 0x33b   : > { %v4598_v52 = vsel %vm2381_vm2, %v4575_v15, %v4577_v55  ;;  %v4600_v51 = vrot.slane %v2344_v29, 7  ;;  %v4602_v50 = vrot.slane %v2345_v6, 7  ;;  %v4604_v54 = vrot.slane %v2346_v53, 7  ;;  %v3199_v29 = vld [vmem:[%s3385_s7 + $0x58] sm:$0x3]  ;;  %v3200_v53 = vld [vmem:[%s3385_s7 + $0x60] sm:$0xff] }
 0x33c   : > { %v4609_v2 = vsel %vm2381_vm2, %v4579_v62, %v4591_v57  ;;  %v2478_v60 = vadd.f32 %v3191_v47, %v2382_v22  ;;  %v2479_v26 = vadd.f32 %v3192_v59, %v2384_v5  ;;  %v2480_v33 = vadd.f32 %v3193_v4, %v2383_v32  ;;  %v3201_v32 = vld [vmem:[%s3385_s7 + $0x68] sm:$0xff] }
 0x33d   : > { %v4617_v0 = vsel %vm2381_vm2, %v4593_v18, %v4600_v51  ;;  %v4622_v49 = vsel %vm2381_vm2, %v4602_v50, %v4604_v54  ;;  %v2481_v63 = vadd.f32 %v3194_v9, %v2385_v20  ;;  %v2482_v56 = vadd.f32 %v3195_v34, %v2387_v13 }
 0x33e   : > { %2526 = vst [vmem:[%s4452_s27 - $0x1] sm:$0xfe] %v2478_v60  ;;  %v2483_v35 = vadd.f32 %v3196_v48, %v2386_v28  ;;  %v2484_v46 = vadd.f32 %v3197_v44, %v2388_v41  ;;  %v2485_v16 = vadd.f32 %v3198_v37, %v2390_v24  ;;  %v2486_v6 = vadd.f32 %v3199_v29, %v2389_v23  ;;  %v3202_v28 = vld [vmem:[%s3385_s7 + $0x70] sm:$0x3]  ;;  %v3203_v23 = vld [vmem:[%s3385_s7 + $0x78] sm:$0xff] }
 0x33f   : > { %2527 = vst [vmem:[%s4452_s27 + $0x7] sm:$0xff] %v2479_v26  ;;  %v2487_v22 = vadd.f32 %v3200_v53, %v2391_v11  ;;  %v2488_v20 = vadd.f32 %v3201_v32, %v2393_v14  ;;  %v2489_v41 = vadd.f32 %v3202_v28, %v4516_v8  ;;  %v2490_v5 = vadd.f32 %v3203_v23, %v4518_v21  ;;  %v3204_v11 = vld [vmem:[%s3385_s7 + $0x80] sm:$0xff]  ;;  %v3205_v24 = vld [vmem:[%s3385_s7 + $0x88] sm:$0x3]  ;;  %v3206_v8 = vld [vmem:[%s3385_s7 + $0x90] sm:$0xff] }
 0x340   : > { %2528 = vst [vmem:[%s4452_s27 + $0xf] sm:$0x1] %v2480_v33  ;;  %v2491_v13 = vadd.f32 %v3204_v11, %v4537_v17  ;;  %v2492_v14 = vadd.f32 %v3205_v24, %v4522_v19  ;;  %v2493_v47 = vadd.f32 %v3206_v8, %v4524_v10  ;;  %v3207_v21 = vld [vmem:[%s3385_s7 + $0x98] sm:$0xff]  ;;  %v3208_v17 = vld [vmem:[%s3385_s7 + $0xa0] sm:$0x3]  ;;  %v3209_v19 = vld [vmem:[%s3385_s7 + $0xa8] sm:$0xff] }
 0x341   : > { %2529 = vst [vmem:[%s4452_s27 + $0xf] sm:$0xfe] %v2481_v63  ;;  %v2494_v60 = vadd.f32 %v3207_v21, %v4548_v3  ;;  %v2495_v59 = vadd.f32 %v3208_v17, %v4528_v30  ;;  %v2496_v26 = vadd.f32 %v3209_v19, %v4530_v27  ;;  %v3210_v10 = vld [vmem:[%s3385_s7 + $0xb0] sm:$0xff]  ;;  %v3211_v3 = vld [vmem:[%s3385_s7 + $0xb8] sm:$0x3]  ;;  %v3212_v30 = vld [vmem:[%s3385_s7 + $0xc0] sm:$0xff] }
 0x342   : > { %2530 = vst [vmem:[%s4452_s27 + $0x17] sm:$0xff] %v2482_v56  ;;  %v2497_v4 = vadd.f32 %v3210_v10, %v4553_v58  ;;  %v2498_v33 = vadd.f32 %v3211_v3, %v4532_v40  ;;  %v2499_v9 = vadd.f32 %v3212_v30, %v4539_v36  ;;  %v3213_v27 = vld [vmem:[%s3385_s7 + $0xc8] sm:$0xff]  ;;  %v3214_v58 = vld [vmem:[%s3385_s7 + $0xd0] sm:$0x3]  ;;  %v3215_v40 = vld [vmem:[%s3385_s7 + $0xd8] sm:$0xff] }
 0x343   : > { %2531 = vst [vmem:[%s4452_s27 + $0x1f] sm:$0x1] %v2483_v35  ;;  %v2500_v63 = vadd.f32 %v3213_v27, %v4562_v39  ;;  %v2501_v34 = vadd.f32 %v3214_v58, %v4541_v1  ;;  %v2502_v56 = vadd.f32 %v3215_v40, %v4543_v31  ;;  %v3216_v36 = vld [vmem:[%s3385_s7 + $0xe0] sm:$0xff]  ;;  %v3217_v39 = vld [vmem:[%s3385_s7 + $0xe8] sm:$0x3]  ;;  %v3218_v1 = vld [vmem:[%s3385_s7 + $0xf0] sm:$0xff] }
 0x344   : > { %2532 = vst [vmem:[%s4452_s27 + $0x1f] sm:$0xfe] %v2484_v46  ;;  %v2503_v48 = vadd.f32 %v3216_v36, %v4573_v12  ;;  %v2504_v35 = vadd.f32 %v3217_v39, %v4555_v43  ;;  %v2505_v44 = vadd.f32 %v3218_v1, %v4557_v25  ;;  %v3219_v31 = vld [vmem:[%s3385_s7 + $0xf8] sm:$0xff]  ;;  %v3220_v12 = vld [vmem:[%s3385_s7 + $0x100] sm:$0x3]  ;;  %v3221_v43 = vld [vmem:[%s3385_s7 + $0x108] sm:$0xff] }
 0x345   : > { %2533 = vst [vmem:[%s4452_s27 + $0x27] sm:$0xff] %v2485_v16  ;;  %v2506_v46 = vadd.f32 %v3219_v31, %v4584_v38  ;;  %v2507_v37 = vadd.f32 %v3220_v12, %v4564_v61  ;;  %v2508_v16 = vadd.f32 %v3221_v43, %v4566_v45  ;;  %v3222_v25 = vld [vmem:[%s3385_s7 + $0x110] sm:$0xff]  ;;  %v3223_v38 = vld [vmem:[%s3385_s7 + $0x118] sm:$0x3]  ;;  %v3224_v61 = vld [vmem:[%s3385_s7 + $0x120] sm:$0xff] }
 0x346   : > { %2534 = vst [vmem:[%s4452_s27 + $0x2f] sm:$0x1] %v2486_v6  ;;  %v2509_v29 = vadd.f32 %v3222_v25, %v4589_v42  ;;  %v2510_v6 = vadd.f32 %v3223_v38, %v4568_v7  ;;  %v2511_v53 = vadd.f32 %v3224_v61, %v4575_v15  ;;  %v3225_v45 = vld [vmem:[%s3385_s7 + $0x128] sm:$0xff]  ;;  %v3226_v42 = vld [vmem:[%s3385_s7 + $0x130] sm:$0x3]  ;;  %v3227_v7 = vld [vmem:[%s3385_s7 + $0x138] sm:$0xff] }
 0x347   : > { %2535 = vst [vmem:[%s4452_s27 + $0x2f] sm:$0xfe] %v2487_v22  ;;  %v2512_v22 = vadd.f32 %v3225_v45, %v4598_v52  ;;  %v2513_v32 = vadd.f32 %v3226_v42, %v4577_v55  ;;  %v3228_v15 = vld [vmem:[%s3385_s7 + $0x140] sm:$0xff]  ;;  %v3229_v52 = vld [vmem:[%s3385_s7 + $0x148] sm:$0x3] }
 0x348   : > { %2536 = vst [vmem:[%s4452_s27 + $0x37] sm:$0xff] %v2488_v20  ;;  %v2514_v20 = vadd.f32 %v3227_v7, %v4579_v62  ;;  %v2515_v28 = vadd.f32 %v3228_v15, %v4609_v2  ;;  %v2516_v55 = vadd.f32 %v3229_v52, %v4591_v57  ;;  %v3231_v62 = vld [vmem:[%s3385_s7 + $0x158] sm:$0xff] }
 0x349   : > { %2537 = vst [vmem:[%s4452_s27 + $0x3f] sm:$0x1] %v2489_v41  ;;  %v3230_v41 = vld [vmem:[%s3385_s7 + $0x150] sm:$0xff]  ;;  %v2518_v2 = vadd.f32 %v3231_v62, %v4617_v0  ;;  %v3235_v0 = vld [vmem:[%s3385_s7 + $0x178] sm:$0x3] }
 0x34a   : > { %2538 = vst [vmem:[%s4452_s27 + $0x3f] sm:$0xfe] %v2490_v5  ;;  %v2517_v23 = vadd.f32 %v3230_v41, %v4593_v18  ;;  %v3232_v5 = vld [vmem:[%s3385_s7 + $0x160] sm:$0x3]  ;;  %v3233_v18 = vld [vmem:[%s3385_s7 + $0x168] sm:$0xff] }
 0x34b   : > { %2539 = vst [vmem:[%s4452_s27 + $0x47] sm:$0xff] %v2491_v13  ;;  %v2519_v57 = vadd.f32 %v3232_v5, %v4600_v51  ;;  %v2520_v11 = vadd.f32 %v3233_v18, %v4602_v50  ;;  %v3234_v13 = vld [vmem:[%s3385_s7 + $0x170] sm:$0xff] }
 0x34c   : > { %2540 = vst [vmem:[%s4452_s27 + $0x4f] sm:$0x1] %v2492_v14  ;;  %v2521_v24 = vadd.f32 %v3234_v13, %v4622_v49  ;;  %v2522_v14 = vadd.f32 %v3235_v0, %v4604_v54 }
 0x34d   : > { %2541 = vst [vmem:[%s4452_s27 + $0x4f] sm:$0xfe] %v2493_v47 }
 0x34e   : > { %2542 = vst [vmem:[%s4452_s27 + $0x57] sm:$0xff] %v2494_v60 }
 0x34f   : > { %2543 = vst [vmem:[%s4452_s27 + $0x5f] sm:$0x1] %v2495_v59 }
 0x350   : > { %2544 = vst [vmem:[%s4452_s27 + $0x5f] sm:$0xfe] %v2496_v26 }
 0x351   : > { %2545 = vst [vmem:[%s4452_s27 + $0x67] sm:$0xff] %v2497_v4 }
 0x352   : > { %2546 = vst [vmem:[%s4452_s27 + $0x6f] sm:$0x1] %v2498_v33 }
 0x353   : > { %2547 = vst [vmem:[%s4452_s27 + $0x6f] sm:$0xfe] %v2499_v9 }
 0x354   : > { %2548 = vst [vmem:[%s4452_s27 + $0x77] sm:$0xff] %v2500_v63 }
 0x355   : > { %2549 = vst [vmem:[%s4452_s27 + $0x7f] sm:$0x1] %v2501_v34 }
 0x356   : > { %2550 = vst [vmem:[%s4452_s27 + $0x7f] sm:$0xfe] %v2502_v56 }
 0x357   : > { %2551 = vst [vmem:[%s4452_s27 + $0x87] sm:$0xff] %v2503_v48 }
 0x358   : > { %2552 = vst [vmem:[%s4452_s27 + $0x8f] sm:$0x1] %v2504_v35 }
 0x359   : > { %2553 = vst [vmem:[%s4452_s27 + $0x8f] sm:$0xfe] %v2505_v44 }
 0x35a   : > { %2554 = vst [vmem:[%s4452_s27 + $0x97] sm:$0xff] %v2506_v46 }
 0x35b   : > { %2555 = vst [vmem:[%s4452_s27 + $0x9f] sm:$0x1] %v2507_v37 }
 0x35c   : > { %2556 = vst [vmem:[%s4452_s27 + $0x9f] sm:$0xfe] %v2508_v16 }
 0x35d   : > { %2557 = vst [vmem:[%s4452_s27 + $0xa7] sm:$0xff] %v2509_v29 }
 0x35e   : > { %2558 = vst [vmem:[%s4452_s27 + $0xaf] sm:$0x1] %v2510_v6 }
 0x35f   : > { %2559 = vst [vmem:[%s4452_s27 + $0xaf] sm:$0xfe] %v2511_v53 }
 0x360   : > { %2560 = vst [vmem:[%s4452_s27 + $0xb7] sm:$0xff] %v2512_v22 }
 0x361   : > { %2561 = vst [vmem:[%s4452_s27 + $0xbf] sm:$0x1] %v2513_v32 }
 0x362   : > { %2562 = vst [vmem:[%s4452_s27 + $0xbf] sm:$0xfe] %v2514_v20 }
 0x363   : > { %2563 = vst [vmem:[%s4452_s27 + $0xc7] sm:$0xff] %v2515_v28 }
 0x364   : > { %2564 = vst [vmem:[%s4452_s27 + $0xcf] sm:$0x1] %v2516_v55 }
 0x365   : > { %2565 = vst [vmem:[%s4452_s27 + $0xcf] sm:$0xfe] %v2517_v23 }
 0x366   : > { %2566 = vst [vmem:[%s4452_s27 + $0xd7] sm:$0xff] %v2518_v2 }
 0x367   : > { %2567 = vst [vmem:[%s4452_s27 + $0xdf] sm:$0x1] %v2519_v57 }
 0x368   : > { %2568 = vst [vmem:[%s4452_s27 + $0xdf] sm:$0xfe] %v2520_v11 }
 0x369   : > { %2569 = vst [vmem:[%s4452_s27 + $0xe7] sm:$0xff] %v2521_v24 }
 0x36a   : > { %2570 = vst [vmem:[%s4452_s27 + $0xef] sm:$0x1] %v2522_v14 }
 0x36b   : > { %3263 = shalt.err (!%p3260_p3)
}
 0x36c   : > { %s3300_s22 = smov 128   ;;  %s3301_s23 = smov 8  }
 0x36d   : > { %3145 = dma.vmem_to_hbm [thread:$0]  (%p3355_p5), %s2588_s3, 4096, %s2590_s4, %s2575_s5, %s3300_s22, %s3300_s22, %s3301_s23  }
 0x36e PF: > { %p3151_p4 = scmp.ge.s32.totalorder %s3298_s12, 2  ;;  %s2604_s24 = sand.u32 1, %s3286_s9  }
 0x36f   : > { %s2605_s25 = scalar_lea.sflag [#allocation3], %s2604_s24 }
 0x370   : > { %p3148_p7 = pnand %p3151_p4, %p3359_p6 }
 0x372   : > { %p3149_p8 = pneg %p3148_p7 }
 0x374   : > { %3281 = dma.done.wait (%p3149_p8), %s2605_s25, 4096  }
 0x375   : > { %3283 = vsyncadd (%p3149_p8), %s2605_s25, 4294963200  ;;  %p12_p9 = scmp.ge.s32.totalorder %s3342_s15, 4   ;;  %s4887_s9 = smov %s3290_s10 }
 0x376   : > { %s4888_s10 = smov %s3294_s11  ;;  %s4889_s11 = smov %s3353_s18 }
 0x377   : > { %s4890_s12 = smov %s3342_s15  ;;  %14 = sbr.rel (!%p12_p9) target bundleno = 3 (0x3), region = 65 }
 0x37c   :  { %2611 = vsyncpa [#allocation3], 1 }
 0x37d   :  { %2613 = vsyncpa [#allocation3 + $0x1], 1 }

</bundles_post_ra>
